<compile_context>
chip_gen: v5e
topology: v5e:2x2
jax: 0.10.0
libtpu: 0.0.40
codegen_flags: <defaults>
</compile_context>

<pallas_src>
import jax
import jax.numpy as jnp
import numpy as np
from jax.experimental import pallas as pl
from jax.experimental.pallas import tpu as pltpu


# --------------------------------------------------------------------------
# Pallas kernel: embedding rows -> fused-direction 2-layer BiLSTM -> MLP head
# --------------------------------------------------------------------------
def _prompt_embedding_kernel(emb_ref,      # (T, H)        embedding(arange(T))
                             w_ih_ref,     # (4, H, 4*D)   [layer*2+dir], packed, zero-padded
                             w_hh_ref,     # (2, D, 4*D)   [layer], block packed
                             b_ref,        # (2, 1, 4*D)   [layer], bias_ih+bias_hh, both dirs
                             w1_ref,       # (H, H)        mlp linear-1, transposed
                             b1_ref,       # (1, H)
                             w2_ref,       # (H, H)        mlp linear-2, transposed
                             b2_ref,       # (1, H)
                             out_ref,      # (T, H)
                             h_buf):       # (T, H) VMEM scratch: per-layer LSTM output
    T, H = emb_ref.shape
    Hh = H // 2
    D = 2 * Hh            # fused bidirectional state width (== H)

    x = emb_ref[...].astype(jnp.float32)   # (T, H)

    # 2-layer bidirectional LSTM, both directions fused per layer.
    for layer in range(2):
        # Input contributions for every timestep, one MXU pass per direction
        # (weights are zero-padded so each lands only in its own gate columns).
        xg_f = jnp.dot(x, w_ih_ref[layer * 2 + 0],
                       preferred_element_type=jnp.float32)            # (T, 4*D)
        xg_b = jnp.dot(x, w_ih_ref[layer * 2 + 1],
                       preferred_element_type=jnp.float32)            # (T, 4*D)
        xg_f = xg_f + b_ref[layer]        # fold both directions' biases once
        w_hh = w_hh_ref[layer]            # (D, 4*D) block matrix: h_fwd->dir0, h_bwd->dir1

        h = jnp.zeros((1, D), jnp.float32)   # [h_fwd | h_bwd]
        c = jnp.zeros((1, D), jnp.float32)   # [c_fwd | c_bwd]
        for s in range(T):                   # static unroll (T small)
            r = T - 1 - s                    # position processed by the bwd direction
            g = (xg_f[s:s + 1, :] + xg_b[r:r + 1, :]
                 + jnp.dot(h, w_hh, preferred_element_type=jnp.float32))   # (1, 4*D)
            # Packed gate layout: [i | f | o | g], each block = [fwd | bwd].
            sig = jax.nn.sigmoid(g[:, :3 * D])     # i, f, o in one contiguous sigmoid
            tg = jnp.tanh(g[:, 3 * D:])            # cell candidate, both directions
            c = sig[:, D:2 * D] * c + sig[:, 0:D] * tg
            h = sig[:, 2 * D:3 * D] * jnp.tanh(c)
            # fwd half of h belongs to position s, bwd half to position r.
            h_buf[s:s + 1, 0:Hh] = h[:, 0:Hh]
            h_buf[r:r + 1, Hh:H] = h[:, Hh:D]
        x = h_buf[...]                      # (T, H) layer output, PyTorch [fwd|bwd] layout

    # MLP head: Linear -> ReLU -> Linear
    y = jnp.dot(x, w1_ref[...], preferred_element_type=jnp.float32) + b1_ref[...]
    y = jnp.maximum(y, 0.0)
    y = jnp.dot(y, w2_ref[...], preferred_element_type=jnp.float32) + b2_ref[...]
    out_ref[...] = y.astype(out_ref.dtype)


# --------------------------------------------------------------------------
# One-time weight packing (kept OUT of the per-call path).
# --------------------------------------------------------------------------
def pack_prompt_params(params):
    """Pack PyTorch-layout LSTM / MLP weights into the fused-direction layout."""
    emb = params["embedding"].astype(jnp.float32)
    T, H = emb.shape
    Hh = H // 2
    D = 2 * Hh
    assert H % 2 == 0 and D == H, "requires LSTM hidden = H//2 (bidirectional width == H)"

    # torch gate order (rows of weight_ih/hh) is [i, f, g, o];
    # packed column order is [i, f, o, g], each block = [dir0 (Hh) | dir1 (Hh)].
    torch_gate_index = {"i": 0, "f": 1, "g": 2, "o": 3}
    packed_gates = ["i", "f", "o", "g"]

    w_ih_list, w_hh_list, b_list = [], [], []
    for layer in range(2):
        w_hh_packed = jnp.zeros((D, 4 * D), jnp.float32)
        b_packed = jnp.zeros((1, 4 * D), jnp.float32)
        for d in range(2):
            w_ih_t = jnp.transpose(params["lstm_w_ih"][layer][d])   # (H, 4*Hh)
            w_hh_t = jnp.transpose(params["lstm_w_hh"][layer][d])   # (Hh, 4*Hh)
            bias = (params["lstm_b_ih"][layer][d]
                    + params["lstm_b_hh"][layer][d])                 # (4*Hh,)
            w_ih_packed = jnp.zeros((H, 4 * D), jnp.float32)
            for b_idx, gate in enumerate(packed_gates):
                gsrc = torch_gate_index[gate]
                src = slice(gsrc * Hh, (gsrc + 1) * Hh)
                dst = slice(b_idx * D + d * Hh, b_idx * D + (d + 1) * Hh)
                w_ih_packed = w_ih_packed.at[:, dst].set(w_ih_t[:, src])
                w_hh_packed = w_hh_packed.at[d * Hh:(d + 1) * Hh, dst].set(w_hh_t[:, src])
                b_packed = b_packed.at[:, dst].set(bias[src][None, :])
            w_ih_list.append(w_ih_packed)   # index = layer*2 + dir
        w_hh_list.append(w_hh_packed)
        b_list.append(b_packed)

    return {
        "emb": emb,                                   # (T, H)
        "w_ih": jnp.stack(w_ih_list, axis=0),         # (4, H, 4*D)
        "w_hh": jnp.stack(w_hh_list, axis=0),         # (2, D, 4*D)
        "bias": jnp.stack(b_list, axis=0),            # (2, 1, 4*D)
        "w1": jnp.transpose(params["mlp_w1"]),        # (H, H)
        "b1": params["mlp_b1"][None, :],              # (1, H)
        "w2": jnp.transpose(params["mlp_w2"]),        # (H, H)
        "b2": params["mlp_b2"][None, :],              # (1, H)
    }


def prompt_embedding_forward_packed(packed):
    """Single grid-less Pallas call; all tensors resident in VMEM."""
    T, H = packed["emb"].shape
    vmem = pl.BlockSpec(memory_space=pltpu.MemorySpace.VMEM)
    return pl.pallas_call(
        _prompt_embedding_kernel,
        out_shape=jax.ShapeDtypeStruct((T, H), jnp.float32),
        in_specs=[vmem] * 8,
        out_specs=vmem,
        scratch_shapes=[pltpu.VMEM((T, H), jnp.float32)],
    )(packed["emb"], packed["w_ih"], packed["w_hh"], packed["bias"],
      packed["w1"], packed["b1"], packed["w2"], packed["b2"])


def prompt_embedding_forward(params):
    """Convenience: pack (once per call) + run. Prefer packing once outside."""
    return prompt_embedding_forward_packed(pack_prompt_params(params))


# --------------------------------------------------------------------------
# Pure-JAX reference (same PyTorch LSTM/MLP semantics) for validation.
# --------------------------------------------------------------------------
def prompt_embedding_reference(params):
    x = params["embedding"].astype(jnp.float32)     # (T, H)
    T, H = x.shape
    Hh = H // 2

    for layer in range(2):
        dir_outs = []
        for direction in range(2):
            w_ih = params["lstm_w_ih"][layer][direction]   # (4*Hh, in)
            w_hh = params["lstm_w_hh"][layer][direction]   # (4*Hh, Hh)
            b = params["lstm_b_ih"][layer][direction] + params["lstm_b_hh"][layer][direction]
            h = jnp.zeros((Hh,), jnp.float32)
            c = jnp.zeros((Hh,), jnp.float32)
            hs = [None] * T
            order = range(T) if direction == 0 else range(T - 1, -1, -1)
            for t in order:
                g = w_ih @ x[t] + w_hh @ h + b
                i_g = jax.nn.sigmoid(g[0 * Hh:1 * Hh])
                f_g = jax.nn.sigmoid(g[1 * Hh:2 * Hh])
                c_g = jnp.tanh(g[2 * Hh:3 * Hh])
                o_g = jax.nn.sigmoid(g[3 * Hh:4 * Hh])
                c = f_g * c + i_g * c_g
                h = o_g * jnp.tanh(c)
                hs[t] = h
            dir_outs.append(jnp.stack(hs, axis=0))
        x = jnp.concatenate(dir_outs, axis=-1)

    y = x @ params["mlp_w1"].T + params["mlp_b1"]
    y = jnp.maximum(y, 0.0)
    y = y @ params["mlp_w2"].T + params["mlp_b2"]
    return y


# --------------------------------------------------------------------------
# Deterministic parameter construction (shapes from PromptEmbedding.__init__).
# --------------------------------------------------------------------------
def init_params(key, hidden_size, n_trigger_b, n_trigger_i, n_trigger_e):
    H = hidden_size
    Hh = H // 2
    T = n_trigger_b + n_trigger_i + n_trigger_e
    keys = jax.random.split(key, 32)
    ki = iter(range(32))

    def unif(k, shape, fan):
        bound = 1.0 / np.sqrt(fan)
        return jax.random.uniform(k, shape, jnp.float32, -bound, bound)

    params = {}
    # torch.nn.Embedding default init: N(0, 1)
    params["embedding"] = jax.random.normal(keys[next(ki)], (T, H), jnp.float32)

    # 2-layer bidirectional LSTM (hidden = H//2). Layer-0 in = H, layer-1 in = 2*Hh = H.
    params["lstm_w_ih"] = [[unif(keys[next(ki)], (4 * Hh, H), Hh) for _ in range(2)]
                           for _ in range(2)]
    params["lstm_w_hh"] = [[unif(keys[next(ki)], (4 * Hh, Hh), Hh) for _ in range(2)]
                           for _ in range(2)]
    params["lstm_b_ih"] = [[unif(keys[next(ki)], (4 * Hh,), Hh) for _ in range(2)]
                           for _ in range(2)]
    params["lstm_b_hh"] = [[unif(keys[next(ki)], (4 * Hh,), Hh) for _ in range(2)]
                           for _ in range(2)]

    # MLP head: Linear(H,H) -> ReLU -> Linear(H,H)
    params["mlp_w1"] = unif(keys[next(ki)], (H, H), H)
    params["mlp_b1"] = unif(keys[next(ki)], (H,), H)
    params["mlp_w2"] = unif(keys[next(ki)], (H, H), H)
    params["mlp_b2"] = unif(keys[next(ki)], (H,), H)
    return params


if __name__ == "__main__":
    hidden_size = 32
    n_trigger_b, n_trigger_i, n_trigger_e = 2, 3, 3      # T = 8 prompt tokens

    key = jax.random.PRNGKey(0)
    params = init_params(key, hidden_size, n_trigger_b, n_trigger_i, n_trigger_e)

    # Pack weights once, outside the per-call path.
    packed = jax.block_until_ready(pack_prompt_params(params))

    out = prompt_embedding_forward_packed(packed)
    out = jax.block_until_ready(out)

    ref = prompt_embedding_reference(params)
    np.testing.assert_allclose(np.asarray(out), np.asarray(ref), rtol=1e-4, atol=1e-4)

    assert out.shape == (n_trigger_b + n_trigger_i + n_trigger_e, hidden_size)
    print("KERNEL_OK")
</pallas_src>

<mosaic_0001>
module attributes {stable_mosaic.version = 11 : i64} {
  func.func @_prompt_embedding_kernel(%arg0: memref<8x32xf32, #tpu.memory_space<vmem>>, %arg1: memref<4x32x128xf32, #tpu.memory_space<vmem>>, %arg2: memref<2x32x128xf32, #tpu.memory_space<vmem>>, %arg3: memref<2x1x128xf32, #tpu.memory_space<vmem>>, %arg4: memref<32x32xf32, #tpu.memory_space<vmem>>, %arg5: memref<1x32xf32, #tpu.memory_space<vmem>>, %arg6: memref<32x32xf32, #tpu.memory_space<vmem>>, %arg7: memref<1x32xf32, #tpu.memory_space<vmem>>, %arg8: memref<8x32xf32, #tpu.memory_space<vmem>>, %arg9: memref<8x32xf32, #tpu.memory_space<vmem>>) attributes {dimension_semantics = [], scalar_prefetch = 0 : i64, scratch_operands = 1 : i64, tpu.core_type = #tpu.core_type<tc>} {
    %c0 = arith.constant 0 : index
    %c0_0 = arith.constant 0 : index
    %0 = vector.load %arg0[%c0, %c0_0] : memref<8x32xf32, #tpu.memory_space<vmem>>, vector<8x32xf32>
    %c0_1 = arith.constant 0 : index
    %c0_2 = arith.constant 0 : index
    %c0_3 = arith.constant 0 : index
    %1 = vector.load %arg1[%c0_1, %c0_2, %c0_3] : memref<4x32x128xf32, #tpu.memory_space<vmem>>, vector<1x32x128xf32>
    %2 = vector.shape_cast %1 : vector<1x32x128xf32> to vector<32x128xf32>
    %cst = arith.constant dense<0.000000e+00> : vector<8x128xf32>
    %3 = tpu.matmul %0, %2, %cst {dimension_numbers = #tpu.dot_dimension_numbers<[1], [0], [0], [1], [0, 0, 1, 1], [], []>} : vector<8x32xf32>, vector<32x128xf32>, vector<8x128xf32> -> vector<8x128xf32>
    %c1 = arith.constant 1 : index
    %c0_4 = arith.constant 0 : index
    %c0_5 = arith.constant 0 : index
    %4 = vector.load %arg1[%c1, %c0_4, %c0_5] : memref<4x32x128xf32, #tpu.memory_space<vmem>>, vector<1x32x128xf32>
    %5 = vector.shape_cast %4 : vector<1x32x128xf32> to vector<32x128xf32>
    %cst_6 = arith.constant dense<0.000000e+00> : vector<8x128xf32>
    %6 = tpu.matmul %0, %5, %cst_6 {dimension_numbers = #tpu.dot_dimension_numbers<[1], [0], [0], [1], [0, 0, 1, 1], [], []>} : vector<8x32xf32>, vector<32x128xf32>, vector<8x128xf32> -> vector<8x128xf32>
    %c0_7 = arith.constant 0 : index
    %c0_8 = arith.constant 0 : index
    %c0_9 = arith.constant 0 : index
    %7 = vector.load %arg3[%c0_7, %c0_8, %c0_9] : memref<2x1x128xf32, #tpu.memory_space<vmem>>, vector<1x1x128xf32>
    %8 = vector.shape_cast %7 : vector<1x1x128xf32> to vector<1x128xf32>
    %9 = vector.broadcast %8 : vector<1x128xf32> to vector<8x128xf32>
    %10 = arith.addf %3, %9 : vector<8x128xf32>
    %c0_10 = arith.constant 0 : index
    %c0_11 = arith.constant 0 : index
    %c0_12 = arith.constant 0 : index
    %11 = vector.load %arg2[%c0_10, %c0_11, %c0_12] : memref<2x32x128xf32, #tpu.memory_space<vmem>>, vector<1x32x128xf32>
    %12 = vector.shape_cast %11 : vector<1x32x128xf32> to vector<32x128xf32>
    %cst_13 = arith.constant 0.000000e+00 : f32
    %13 = vector.broadcast %cst_13 : f32 to vector<1x32xf32>
    %cst_14 = arith.constant 0.000000e+00 : f32
    %14 = vector.broadcast %cst_14 : f32 to vector<1x32xf32>
    %15 = vector.extract_strided_slice %10 {offsets = [0, 0], sizes = [1, 128], strides = [1, 1]} : vector<8x128xf32> to vector<1x128xf32>
    %16 = vector.extract_strided_slice %6 {offsets = [7, 0], sizes = [1, 128], strides = [1, 1]} : vector<8x128xf32> to vector<1x128xf32>
    %17 = arith.addf %15, %16 : vector<1x128xf32>
    %cst_15 = arith.constant dense<0.000000e+00> : vector<1x128xf32>
    %18 = tpu.matmul %13, %12, %cst_15 {dimension_numbers = #tpu.dot_dimension_numbers<[1], [0], [0], [1], [0, 0, 1, 1], [], []>} : vector<1x32xf32>, vector<32x128xf32>, vector<1x128xf32> -> vector<1x128xf32>
    %19 = arith.addf %17, %18 : vector<1x128xf32>
    %20 = vector.extract_strided_slice %19 {offsets = [0, 0], sizes = [1, 96], strides = [1, 1]} : vector<1x128xf32> to vector<1x96xf32>
    %21 = arith.negf %20 : vector<1x96xf32>
    %22 = math.exp %21 : vector<1x96xf32>
    %cst_16 = arith.constant 1.000000e+00 : f32
    %23 = vector.broadcast %cst_16 : f32 to vector<1x96xf32>
    %24 = arith.addf %23, %22 : vector<1x96xf32>
    %25 = arith.divf %23, %24 : vector<1x96xf32>
    %26 = vector.extract_strided_slice %19 {offsets = [0, 96], sizes = [1, 32], strides = [1, 1]} : vector<1x128xf32> to vector<1x32xf32>
    %27 = math.tanh %26 : vector<1x32xf32>
    %28 = vector.extract_strided_slice %25 {offsets = [0, 32], sizes = [1, 32], strides = [1, 1]} : vector<1x96xf32> to vector<1x32xf32>
    %29 = arith.mulf %28, %14 : vector<1x32xf32>
    %30 = vector.extract_strided_slice %25 {offsets = [0, 0], sizes = [1, 32], strides = [1, 1]} : vector<1x96xf32> to vector<1x32xf32>
    %31 = arith.mulf %30, %27 : vector<1x32xf32>
    %32 = arith.addf %29, %31 : vector<1x32xf32>
    %33 = vector.extract_strided_slice %25 {offsets = [0, 64], sizes = [1, 32], strides = [1, 1]} : vector<1x96xf32> to vector<1x32xf32>
    %34 = math.tanh %32 : vector<1x32xf32>
    %35 = arith.mulf %33, %34 : vector<1x32xf32>
    %36 = vector.extract_strided_slice %35 {offsets = [0, 0], sizes = [1, 16], strides = [1, 1]} : vector<1x32xf32> to vector<1x16xf32>
    %c0_17 = arith.constant 0 : index
    %c0_18 = arith.constant 0 : index
    %37 = vector.load %arg9[%c0_17, %c0_18] : memref<8x32xf32, #tpu.memory_space<vmem>>, vector<1x16xf32>
    tpu.vector_store %arg9[%c0_17, %c0_18], %36 {strides = array<i32>} : memref<8x32xf32, #tpu.memory_space<vmem>>, vector<1x16xf32>,
    %38 = vector.extract_strided_slice %35 {offsets = [0, 16], sizes = [1, 16], strides = [1, 1]} : vector<1x32xf32> to vector<1x16xf32>
    %c7 = arith.constant 7 : index
    %c16 = arith.constant 16 : index
    %39 = vector.load %arg9[%c7, %c16] : memref<8x32xf32, #tpu.memory_space<vmem>>, vector<1x16xf32>
    tpu.vector_store %arg9[%c7, %c16], %38 {strides = array<i32>} : memref<8x32xf32, #tpu.memory_space<vmem>>, vector<1x16xf32>,
    %40 = vector.extract_strided_slice %10 {offsets = [1, 0], sizes = [1, 128], strides = [1, 1]} : vector<8x128xf32> to vector<1x128xf32>
    %41 = vector.extract_strided_slice %6 {offsets = [6, 0], sizes = [1, 128], strides = [1, 1]} : vector<8x128xf32> to vector<1x128xf32>
    %42 = arith.addf %40, %41 : vector<1x128xf32>
    %cst_19 = arith.constant dense<0.000000e+00> : vector<1x128xf32>
    %43 = tpu.matmul %35, %12, %cst_19 {dimension_numbers = #tpu.dot_dimension_numbers<[1], [0], [0], [1], [0, 0, 1, 1], [], []>} : vector<1x32xf32>, vector<32x128xf32>, vector<1x128xf32> -> vector<1x128xf32>
    %44 = arith.addf %42, %43 : vector<1x128xf32>
    %45 = vector.extract_strided_slice %44 {offsets = [0, 0], sizes = [1, 96], strides = [1, 1]} : vector<1x128xf32> to vector<1x96xf32>
    %46 = arith.negf %45 : vector<1x96xf32>
    %47 = math.exp %46 : vector<1x96xf32>
    %cst_20 = arith.constant 1.000000e+00 : f32
    %48 = vector.broadcast %cst_20 : f32 to vector<1x96xf32>
    %49 = arith.addf %48, %47 : vector<1x96xf32>
    %50 = arith.divf %48, %49 : vector<1x96xf32>
    %51 = vector.extract_strided_slice %44 {offsets = [0, 96], sizes = [1, 32], strides = [1, 1]} : vector<1x128xf32> to vector<1x32xf32>
    %52 = math.tanh %51 : vector<1x32xf32>
    %53 = vector.extract_strided_slice %50 {offsets = [0, 32], sizes = [1, 32], strides = [1, 1]} : vector<1x96xf32> to vector<1x32xf32>
    %54 = arith.mulf %53, %32 : vector<1x32xf32>
    %55 = vector.extract_strided_slice %50 {offsets = [0, 0], sizes = [1, 32], strides = [1, 1]} : vector<1x96xf32> to vector<1x32xf32>
    %56 = arith.mulf %55, %52 : vector<1x32xf32>
    %57 = arith.addf %54, %56 : vector<1x32xf32>
    %58 = vector.extract_strided_slice %50 {offsets = [0, 64], sizes = [1, 32], strides = [1, 1]} : vector<1x96xf32> to vector<1x32xf32>
    %59 = math.tanh %57 : vector<1x32xf32>
    %60 = arith.mulf %58, %59 : vector<1x32xf32>
    %61 = vector.extract_strided_slice %60 {offsets = [0, 0], sizes = [1, 16], strides = [1, 1]} : vector<1x32xf32> to vector<1x16xf32>
    %c1_21 = arith.constant 1 : index
    %c0_22 = arith.constant 0 : index
    %62 = vector.load %arg9[%c1_21, %c0_22] : memref<8x32xf32, #tpu.memory_space<vmem>>, vector<1x16xf32>
    tpu.vector_store %arg9[%c1_21, %c0_22], %61 {strides = array<i32>} : memref<8x32xf32, #tpu.memory_space<vmem>>, vector<1x16xf32>,
    %63 = vector.extract_strided_slice %60 {offsets = [0, 16], sizes = [1, 16], strides = [1, 1]} : vector<1x32xf32> to vector<1x16xf32>
    %c6 = arith.constant 6 : index
    %c16_23 = arith.constant 16 : index
    %64 = vector.load %arg9[%c6, %c16_23] : memref<8x32xf32, #tpu.memory_space<vmem>>, vector<1x16xf32>
    tpu.vector_store %arg9[%c6, %c16_23], %63 {strides = array<i32>} : memref<8x32xf32, #tpu.memory_space<vmem>>, vector<1x16xf32>,
    %65 = vector.extract_strided_slice %10 {offsets = [2, 0], sizes = [1, 128], strides = [1, 1]} : vector<8x128xf32> to vector<1x128xf32>
    %66 = vector.extract_strided_slice %6 {offsets = [5, 0], sizes = [1, 128], strides = [1, 1]} : vector<8x128xf32> to vector<1x128xf32>
    %67 = arith.addf %65, %66 : vector<1x128xf32>
    %cst_24 = arith.constant dense<0.000000e+00> : vector<1x128xf32>
    %68 = tpu.matmul %60, %12, %cst_24 {dimension_numbers = #tpu.dot_dimension_numbers<[1], [0], [0], [1], [0, 0, 1, 1], [], []>} : vector<1x32xf32>, vector<32x128xf32>, vector<1x128xf32> -> vector<1x128xf32>
    %69 = arith.addf %67, %68 : vector<1x128xf32>
    %70 = vector.extract_strided_slice %69 {offsets = [0, 0], sizes = [1, 96], strides = [1, 1]} : vector<1x128xf32> to vector<1x96xf32>
    %71 = arith.negf %70 : vector<1x96xf32>
    %72 = math.exp %71 : vector<1x96xf32>
    %cst_25 = arith.constant 1.000000e+00 : f32
    %73 = vector.broadcast %cst_25 : f32 to vector<1x96xf32>
    %74 = arith.addf %73, %72 : vector<1x96xf32>
    %75 = arith.divf %73, %74 : vector<1x96xf32>
    %76 = vector.extract_strided_slice %69 {offsets = [0, 96], sizes = [1, 32], strides = [1, 1]} : vector<1x128xf32> to vector<1x32xf32>
    %77 = math.tanh %76 : vector<1x32xf32>
    %78 = vector.extract_strided_slice %75 {offsets = [0, 32], sizes = [1, 32], strides = [1, 1]} : vector<1x96xf32> to vector<1x32xf32>
    %79 = arith.mulf %78, %57 : vector<1x32xf32>
    %80 = vector.extract_strided_slice %75 {offsets = [0, 0], sizes = [1, 32], strides = [1, 1]} : vector<1x96xf32> to vector<1x32xf32>
    %81 = arith.mulf %80, %77 : vector<1x32xf32>
    %82 = arith.addf %79, %81 : vector<1x32xf32>
    %83 = vector.extract_strided_slice %75 {offsets = [0, 64], sizes = [1, 32], strides = [1, 1]} : vector<1x96xf32> to vector<1x32xf32>
    %84 = math.tanh %82 : vector<1x32xf32>
    %85 = arith.mulf %83, %84 : vector<1x32xf32>
    %86 = vector.extract_strided_slice %85 {offsets = [0, 0], sizes = [1, 16], strides = [1, 1]} : vector<1x32xf32> to vector<1x16xf32>
    %c2 = arith.constant 2 : index
    %c0_26 = arith.constant 0 : index
    %87 = vector.load %arg9[%c2, %c0_26] : memref<8x32xf32, #tpu.memory_space<vmem>>, vector<1x16xf32>
    tpu.vector_store %arg9[%c2, %c0_26], %86 {strides = array<i32>} : memref<8x32xf32, #tpu.memory_space<vmem>>, vector<1x16xf32>,
    %88 = vector.extract_strided_slice %85 {offsets = [0, 16], sizes = [1, 16], strides = [1, 1]} : vector<1x32xf32> to vector<1x16xf32>
    %c5 = arith.constant 5 : index
    %c16_27 = arith.constant 16 : index
    %89 = vector.load %arg9[%c5, %c16_27] : memref<8x32xf32, #tpu.memory_space<vmem>>, vector<1x16xf32>
    tpu.vector_store %arg9[%c5, %c16_27], %88 {strides = array<i32>} : memref<8x32xf32, #tpu.memory_space<vmem>>, vector<1x16xf32>,
    %90 = vector.extract_strided_slice %10 {offsets = [3, 0], sizes = [1, 128], strides = [1, 1]} : vector<8x128xf32> to vector<1x128xf32>
    %91 = vector.extract_strided_slice %6 {offsets = [4, 0], sizes = [1, 128], strides = [1, 1]} : vector<8x128xf32> to vector<1x128xf32>
    %92 = arith.addf %90, %91 : vector<1x128xf32>
    %cst_28 = arith.constant dense<0.000000e+00> : vector<1x128xf32>
    %93 = tpu.matmul %85, %12, %cst_28 {dimension_numbers = #tpu.dot_dimension_numbers<[1], [0], [0], [1], [0, 0, 1, 1], [], []>} : vector<1x32xf32>, vector<32x128xf32>, vector<1x128xf32> -> vector<1x128xf32>
    %94 = arith.addf %92, %93 : vector<1x128xf32>
    %95 = vector.extract_strided_slice %94 {offsets = [0, 0], sizes = [1, 96], strides = [1, 1]} : vector<1x128xf32> to vector<1x96xf32>
    %96 = arith.negf %95 : vector<1x96xf32>
    %97 = math.exp %96 : vector<1x96xf32>
    %cst_29 = arith.constant 1.000000e+00 : f32
    %98 = vector.broadcast %cst_29 : f32 to vector<1x96xf32>
    %99 = arith.addf %98, %97 : vector<1x96xf32>
    %100 = arith.divf %98, %99 : vector<1x96xf32>
    %101 = vector.extract_strided_slice %94 {offsets = [0, 96], sizes = [1, 32], strides = [1, 1]} : vector<1x128xf32> to vector<1x32xf32>
    %102 = math.tanh %101 : vector<1x32xf32>
    %103 = vector.extract_strided_slice %100 {offsets = [0, 32], sizes = [1, 32], strides = [1, 1]} : vector<1x96xf32> to vector<1x32xf32>
    %104 = arith.mulf %103, %82 : vector<1x32xf32>
    %105 = vector.extract_strided_slice %100 {offsets = [0, 0], sizes = [1, 32], strides = [1, 1]} : vector<1x96xf32> to vector<1x32xf32>
    %106 = arith.mulf %105, %102 : vector<1x32xf32>
    %107 = arith.addf %104, %106 : vector<1x32xf32>
    %108 = vector.extract_strided_slice %100 {offsets = [0, 64], sizes = [1, 32], strides = [1, 1]} : vector<1x96xf32> to vector<1x32xf32>
    %109 = math.tanh %107 : vector<1x32xf32>
    %110 = arith.mulf %108, %109 : vector<1x32xf32>
    %111 = vector.extract_strided_slice %110 {offsets = [0, 0], sizes = [1, 16], strides = [1, 1]} : vector<1x32xf32> to vector<1x16xf32>
    %c3 = arith.constant 3 : index
    %c0_30 = arith.constant 0 : index
    %112 = vector.load %arg9[%c3, %c0_30] : memref<8x32xf32, #tpu.memory_space<vmem>>, vector<1x16xf32>
    tpu.vector_store %arg9[%c3, %c0_30], %111 {strides = array<i32>} : memref<8x32xf32, #tpu.memory_space<vmem>>, vector<1x16xf32>,
    %113 = vector.extract_strided_slice %110 {offsets = [0, 16], sizes = [1, 16], strides = [1, 1]} : vector<1x32xf32> to vector<1x16xf32>
    %c4 = arith.constant 4 : index
    %c16_31 = arith.constant 16 : index
    %114 = vector.load %arg9[%c4, %c16_31] : memref<8x32xf32, #tpu.memory_space<vmem>>, vector<1x16xf32>
    tpu.vector_store %arg9[%c4, %c16_31], %113 {strides = array<i32>} : memref<8x32xf32, #tpu.memory_space<vmem>>, vector<1x16xf32>,
    %115 = vector.extract_strided_slice %10 {offsets = [4, 0], sizes = [1, 128], strides = [1, 1]} : vector<8x128xf32> to vector<1x128xf32>
    %116 = vector.extract_strided_slice %6 {offsets = [3, 0], sizes = [1, 128], strides = [1, 1]} : vector<8x128xf32> to vector<1x128xf32>
    %117 = arith.addf %115, %116 : vector<1x128xf32>
    %cst_32 = arith.constant dense<0.000000e+00> : vector<1x128xf32>
    %118 = tpu.matmul %110, %12, %cst_32 {dimension_numbers = #tpu.dot_dimension_numbers<[1], [0], [0], [1], [0, 0, 1, 1], [], []>} : vector<1x32xf32>, vector<32x128xf32>, vector<1x128xf32> -> vector<1x128xf32>
    %119 = arith.addf %117, %118 : vector<1x128xf32>
    %120 = vector.extract_strided_slice %119 {offsets = [0, 0], sizes = [1, 96], strides = [1, 1]} : vector<1x128xf32> to vector<1x96xf32>
    %121 = arith.negf %120 : vector<1x96xf32>
    %122 = math.exp %121 : vector<1x96xf32>
    %cst_33 = arith.constant 1.000000e+00 : f32
    %123 = vector.broadcast %cst_33 : f32 to vector<1x96xf32>
    %124 = arith.addf %123, %122 : vector<1x96xf32>
    %125 = arith.divf %123, %124 : vector<1x96xf32>
    %126 = vector.extract_strided_slice %119 {offsets = [0, 96], sizes = [1, 32], strides = [1, 1]} : vector<1x128xf32> to vector<1x32xf32>
    %127 = math.tanh %126 : vector<1x32xf32>
    %128 = vector.extract_strided_slice %125 {offsets = [0, 32], sizes = [1, 32], strides = [1, 1]} : vector<1x96xf32> to vector<1x32xf32>
    %129 = arith.mulf %128, %107 : vector<1x32xf32>
    %130 = vector.extract_strided_slice %125 {offsets = [0, 0], sizes = [1, 32], strides = [1, 1]} : vector<1x96xf32> to vector<1x32xf32>
    %131 = arith.mulf %130, %127 : vector<1x32xf32>
    %132 = arith.addf %129, %131 : vector<1x32xf32>
    %133 = vector.extract_strided_slice %125 {offsets = [0, 64], sizes = [1, 32], strides = [1, 1]} : vector<1x96xf32> to vector<1x32xf32>
    %134 = math.tanh %132 : vector<1x32xf32>
    %135 = arith.mulf %133, %134 : vector<1x32xf32>
    %136 = vector.extract_strided_slice %135 {offsets = [0, 0], sizes = [1, 16], strides = [1, 1]} : vector<1x32xf32> to vector<1x16xf32>
    %c4_34 = arith.constant 4 : index
    %c0_35 = arith.constant 0 : index
    %137 = vector.load %arg9[%c4_34, %c0_35] : memref<8x32xf32, #tpu.memory_space<vmem>>, vector<1x16xf32>
    tpu.vector_store %arg9[%c4_34, %c0_35], %136 {strides = array<i32>} : memref<8x32xf32, #tpu.memory_space<vmem>>, vector<1x16xf32>,
    %138 = vector.extract_strided_slice %135 {offsets = [0, 16], sizes = [1, 16], strides = [1, 1]} : vector<1x32xf32> to vector<1x16xf32>
    %c3_36 = arith.constant 3 : index
    %c16_37 = arith.constant 16 : index
    %139 = vector.load %arg9[%c3_36, %c16_37] : memref<8x32xf32, #tpu.memory_space<vmem>>, vector<1x16xf32>
    tpu.vector_store %arg9[%c3_36, %c16_37], %138 {strides = array<i32>} : memref<8x32xf32, #tpu.memory_space<vmem>>, vector<1x16xf32>,
    %140 = vector.extract_strided_slice %10 {offsets = [5, 0], sizes = [1, 128], strides = [1, 1]} : vector<8x128xf32> to vector<1x128xf32>
    %141 = vector.extract_strided_slice %6 {offsets = [2, 0], sizes = [1, 128], strides = [1, 1]} : vector<8x128xf32> to vector<1x128xf32>
    %142 = arith.addf %140, %141 : vector<1x128xf32>
    %cst_38 = arith.constant dense<0.000000e+00> : vector<1x128xf32>
    %143 = tpu.matmul %135, %12, %cst_38 {dimension_numbers = #tpu.dot_dimension_numbers<[1], [0], [0], [1], [0, 0, 1, 1], [], []>} : vector<1x32xf32>, vector<32x128xf32>, vector<1x128xf32> -> vector<1x128xf32>
    %144 = arith.addf %142, %143 : vector<1x128xf32>
    %145 = vector.extract_strided_slice %144 {offsets = [0, 0], sizes = [1, 96], strides = [1, 1]} : vector<1x128xf32> to vector<1x96xf32>
    %146 = arith.negf %145 : vector<1x96xf32>
    %147 = math.exp %146 : vector<1x96xf32>
    %cst_39 = arith.constant 1.000000e+00 : f32
    %148 = vector.broadcast %cst_39 : f32 to vector<1x96xf32>
    %149 = arith.addf %148, %147 : vector<1x96xf32>
    %150 = arith.divf %148, %149 : vector<1x96xf32>
    %151 = vector.extract_strided_slice %144 {offsets = [0, 96], sizes = [1, 32], strides = [1, 1]} : vector<1x128xf32> to vector<1x32xf32>
    %152 = math.tanh %151 : vector<1x32xf32>
    %153 = vector.extract_strided_slice %150 {offsets = [0, 32], sizes = [1, 32], strides = [1, 1]} : vector<1x96xf32> to vector<1x32xf32>
    %154 = arith.mulf %153, %132 : vector<1x32xf32>
    %155 = vector.extract_strided_slice %150 {offsets = [0, 0], sizes = [1, 32], strides = [1, 1]} : vector<1x96xf32> to vector<1x32xf32>
    %156 = arith.mulf %155, %152 : vector<1x32xf32>
    %157 = arith.addf %154, %156 : vector<1x32xf32>
    %158 = vector.extract_strided_slice %150 {offsets = [0, 64], sizes = [1, 32], strides = [1, 1]} : vector<1x96xf32> to vector<1x32xf32>
    %159 = math.tanh %157 : vector<1x32xf32>
    %160 = arith.mulf %158, %159 : vector<1x32xf32>
    %161 = vector.extract_strided_slice %160 {offsets = [0, 0], sizes = [1, 16], strides = [1, 1]} : vector<1x32xf32> to vector<1x16xf32>
    %c5_40 = arith.constant 5 : index
    %c0_41 = arith.constant 0 : index
    %162 = vector.load %arg9[%c5_40, %c0_41] : memref<8x32xf32, #tpu.memory_space<vmem>>, vector<1x16xf32>
    tpu.vector_store %arg9[%c5_40, %c0_41], %161 {strides = array<i32>} : memref<8x32xf32, #tpu.memory_space<vmem>>, vector<1x16xf32>,
    %163 = vector.extract_strided_slice %160 {offsets = [0, 16], sizes = [1, 16], strides = [1, 1]} : vector<1x32xf32> to vector<1x16xf32>
    %c2_42 = arith.constant 2 : index
    %c16_43 = arith.constant 16 : index
    %164 = vector.load %arg9[%c2_42, %c16_43] : memref<8x32xf32, #tpu.memory_space<vmem>>, vector<1x16xf32>
    tpu.vector_store %arg9[%c2_42, %c16_43], %163 {strides = array<i32>} : memref<8x32xf32, #tpu.memory_space<vmem>>, vector<1x16xf32>,
    %165 = vector.extract_strided_slice %10 {offsets = [6, 0], sizes = [1, 128], strides = [1, 1]} : vector<8x128xf32> to vector<1x128xf32>
    %166 = vector.extract_strided_slice %6 {offsets = [1, 0], sizes = [1, 128], strides = [1, 1]} : vector<8x128xf32> to vector<1x128xf32>
    %167 = arith.addf %165, %166 : vector<1x128xf32>
    %cst_44 = arith.constant dense<0.000000e+00> : vector<1x128xf32>
    %168 = tpu.matmul %160, %12, %cst_44 {dimension_numbers = #tpu.dot_dimension_numbers<[1], [0], [0], [1], [0, 0, 1, 1], [], []>} : vector<1x32xf32>, vector<32x128xf32>, vector<1x128xf32> -> vector<1x128xf32>
    %169 = arith.addf %167, %168 : vector<1x128xf32>
    %170 = vector.extract_strided_slice %169 {offsets = [0, 0], sizes = [1, 96], strides = [1, 1]} : vector<1x128xf32> to vector<1x96xf32>
    %171 = arith.negf %170 : vector<1x96xf32>
    %172 = math.exp %171 : vector<1x96xf32>
    %cst_45 = arith.constant 1.000000e+00 : f32
    %173 = vector.broadcast %cst_45 : f32 to vector<1x96xf32>
    %174 = arith.addf %173, %172 : vector<1x96xf32>
    %175 = arith.divf %173, %174 : vector<1x96xf32>
    %176 = vector.extract_strided_slice %169 {offsets = [0, 96], sizes = [1, 32], strides = [1, 1]} : vector<1x128xf32> to vector<1x32xf32>
    %177 = math.tanh %176 : vector<1x32xf32>
    %178 = vector.extract_strided_slice %175 {offsets = [0, 32], sizes = [1, 32], strides = [1, 1]} : vector<1x96xf32> to vector<1x32xf32>
    %179 = arith.mulf %178, %157 : vector<1x32xf32>
    %180 = vector.extract_strided_slice %175 {offsets = [0, 0], sizes = [1, 32], strides = [1, 1]} : vector<1x96xf32> to vector<1x32xf32>
    %181 = arith.mulf %180, %177 : vector<1x32xf32>
    %182 = arith.addf %179, %181 : vector<1x32xf32>
    %183 = vector.extract_strided_slice %175 {offsets = [0, 64], sizes = [1, 32], strides = [1, 1]} : vector<1x96xf32> to vector<1x32xf32>
    %184 = math.tanh %182 : vector<1x32xf32>
    %185 = arith.mulf %183, %184 : vector<1x32xf32>
    %186 = vector.extract_strided_slice %185 {offsets = [0, 0], sizes = [1, 16], strides = [1, 1]} : vector<1x32xf32> to vector<1x16xf32>
    %c6_46 = arith.constant 6 : index
    %c0_47 = arith.constant 0 : index
    %187 = vector.load %arg9[%c6_46, %c0_47] : memref<8x32xf32, #tpu.memory_space<vmem>>, vector<1x16xf32>
    tpu.vector_store %arg9[%c6_46, %c0_47], %186 {strides = array<i32>} : memref<8x32xf32, #tpu.memory_space<vmem>>, vector<1x16xf32>,
    %188 = vector.extract_strided_slice %185 {offsets = [0, 16], sizes = [1, 16], strides = [1, 1]} : vector<1x32xf32> to vector<1x16xf32>
    %c1_48 = arith.constant 1 : index
    %c16_49 = arith.constant 16 : index
    %189 = vector.load %arg9[%c1_48, %c16_49] : memref<8x32xf32, #tpu.memory_space<vmem>>, vector<1x16xf32>
    tpu.vector_store %arg9[%c1_48, %c16_49], %188 {strides = array<i32>} : memref<8x32xf32, #tpu.memory_space<vmem>>, vector<1x16xf32>,
    %190 = vector.extract_strided_slice %10 {offsets = [7, 0], sizes = [1, 128], strides = [1, 1]} : vector<8x128xf32> to vector<1x128xf32>
    %191 = vector.extract_strided_slice %6 {offsets = [0, 0], sizes = [1, 128], strides = [1, 1]} : vector<8x128xf32> to vector<1x128xf32>
    %192 = arith.addf %190, %191 : vector<1x128xf32>
    %cst_50 = arith.constant dense<0.000000e+00> : vector<1x128xf32>
    %193 = tpu.matmul %185, %12, %cst_50 {dimension_numbers = #tpu.dot_dimension_numbers<[1], [0], [0], [1], [0, 0, 1, 1], [], []>} : vector<1x32xf32>, vector<32x128xf32>, vector<1x128xf32> -> vector<1x128xf32>
    %194 = arith.addf %192, %193 : vector<1x128xf32>
    %195 = vector.extract_strided_slice %194 {offsets = [0, 0], sizes = [1, 96], strides = [1, 1]} : vector<1x128xf32> to vector<1x96xf32>
    %196 = arith.negf %195 : vector<1x96xf32>
    %197 = math.exp %196 : vector<1x96xf32>
    %cst_51 = arith.constant 1.000000e+00 : f32
    %198 = vector.broadcast %cst_51 : f32 to vector<1x96xf32>
    %199 = arith.addf %198, %197 : vector<1x96xf32>
    %200 = arith.divf %198, %199 : vector<1x96xf32>
    %201 = vector.extract_strided_slice %194 {offsets = [0, 96], sizes = [1, 32], strides = [1, 1]} : vector<1x128xf32> to vector<1x32xf32>
    %202 = math.tanh %201 : vector<1x32xf32>
    %203 = vector.extract_strided_slice %200 {offsets = [0, 32], sizes = [1, 32], strides = [1, 1]} : vector<1x96xf32> to vector<1x32xf32>
    %204 = arith.mulf %203, %182 : vector<1x32xf32>
    %205 = vector.extract_strided_slice %200 {offsets = [0, 0], sizes = [1, 32], strides = [1, 1]} : vector<1x96xf32> to vector<1x32xf32>
    %206 = arith.mulf %205, %202 : vector<1x32xf32>
    %207 = arith.addf %204, %206 : vector<1x32xf32>
    %208 = vector.extract_strided_slice %200 {offsets = [0, 64], sizes = [1, 32], strides = [1, 1]} : vector<1x96xf32> to vector<1x32xf32>
    %209 = math.tanh %207 : vector<1x32xf32>
    %210 = arith.mulf %208, %209 : vector<1x32xf32>
    %211 = vector.extract_strided_slice %210 {offsets = [0, 0], sizes = [1, 16], strides = [1, 1]} : vector<1x32xf32> to vector<1x16xf32>
    %c7_52 = arith.constant 7 : index
    %c0_53 = arith.constant 0 : index
    %212 = vector.load %arg9[%c7_52, %c0_53] : memref<8x32xf32, #tpu.memory_space<vmem>>, vector<1x16xf32>
    tpu.vector_store %arg9[%c7_52, %c0_53], %211 {strides = array<i32>} : memref<8x32xf32, #tpu.memory_space<vmem>>, vector<1x16xf32>,
    %213 = vector.extract_strided_slice %210 {offsets = [0, 16], sizes = [1, 16], strides = [1, 1]} : vector<1x32xf32> to vector<1x16xf32>
    %c0_54 = arith.constant 0 : index
    %c16_55 = arith.constant 16 : index
    %214 = vector.load %arg9[%c0_54, %c16_55] : memref<8x32xf32, #tpu.memory_space<vmem>>, vector<1x16xf32>
    tpu.vector_store %arg9[%c0_54, %c16_55], %213 {strides = array<i32>} : memref<8x32xf32, #tpu.memory_space<vmem>>, vector<1x16xf32>,
    %c0_56 = arith.constant 0 : index
    %c0_57 = arith.constant 0 : index
    %215 = vector.load %arg9[%c0_56, %c0_57] : memref<8x32xf32, #tpu.memory_space<vmem>>, vector<8x32xf32>
    %c2_58 = arith.constant 2 : index
    %c0_59 = arith.constant 0 : index
    %c0_60 = arith.constant 0 : index
    %216 = vector.load %arg1[%c2_58, %c0_59, %c0_60] : memref<4x32x128xf32, #tpu.memory_space<vmem>>, vector<1x32x128xf32>
    %217 = vector.shape_cast %216 : vector<1x32x128xf32> to vector<32x128xf32>
    %cst_61 = arith.constant dense<0.000000e+00> : vector<8x128xf32>
    %218 = tpu.matmul %215, %217, %cst_61 {dimension_numbers = #tpu.dot_dimension_numbers<[1], [0], [0], [1], [0, 0, 1, 1], [], []>} : vector<8x32xf32>, vector<32x128xf32>, vector<8x128xf32> -> vector<8x128xf32>
    %c3_62 = arith.constant 3 : index
    %c0_63 = arith.constant 0 : index
    %c0_64 = arith.constant 0 : index
    %219 = vector.load %arg1[%c3_62, %c0_63, %c0_64] : memref<4x32x128xf32, #tpu.memory_space<vmem>>, vector<1x32x128xf32>
    %220 = vector.shape_cast %219 : vector<1x32x128xf32> to vector<32x128xf32>
    %cst_65 = arith.constant dense<0.000000e+00> : vector<8x128xf32>
    %221 = tpu.matmul %215, %220, %cst_65 {dimension_numbers = #tpu.dot_dimension_numbers<[1], [0], [0], [1], [0, 0, 1, 1], [], []>} : vector<8x32xf32>, vector<32x128xf32>, vector<8x128xf32> -> vector<8x128xf32>
    %c1_66 = arith.constant 1 : index
    %c0_67 = arith.constant 0 : index
    %c0_68 = arith.constant 0 : index
    %222 = vector.load %arg3[%c1_66, %c0_67, %c0_68] : memref<2x1x128xf32, #tpu.memory_space<vmem>>, vector<1x1x128xf32>
    %223 = vector.shape_cast %222 : vector<1x1x128xf32> to vector<1x128xf32>
    %224 = vector.broadcast %223 : vector<1x128xf32> to vector<8x128xf32>
    %225 = arith.addf %218, %224 : vector<8x128xf32>
    %c1_69 = arith.constant 1 : index
    %c0_70 = arith.constant 0 : index
    %c0_71 = arith.constant 0 : index
    %226 = vector.load %arg2[%c1_69, %c0_70, %c0_71] : memref<2x32x128xf32, #tpu.memory_space<vmem>>, vector<1x32x128xf32>
    %227 = vector.shape_cast %226 : vector<1x32x128xf32> to vector<32x128xf32>
    %cst_72 = arith.constant 0.000000e+00 : f32
    %228 = vector.broadcast %cst_72 : f32 to vector<1x32xf32>
    %cst_73 = arith.constant 0.000000e+00 : f32
    %229 = vector.broadcast %cst_73 : f32 to vector<1x32xf32>
    %230 = vector.extract_strided_slice %225 {offsets = [0, 0], sizes = [1, 128], strides = [1, 1]} : vector<8x128xf32> to vector<1x128xf32>
    %231 = vector.extract_strided_slice %221 {offsets = [7, 0], sizes = [1, 128], strides = [1, 1]} : vector<8x128xf32> to vector<1x128xf32>
    %232 = arith.addf %230, %231 : vector<1x128xf32>
    %cst_74 = arith.constant dense<0.000000e+00> : vector<1x128xf32>
    %233 = tpu.matmul %228, %227, %cst_74 {dimension_numbers = #tpu.dot_dimension_numbers<[1], [0], [0], [1], [0, 0, 1, 1], [], []>} : vector<1x32xf32>, vector<32x128xf32>, vector<1x128xf32> -> vector<1x128xf32>
    %234 = arith.addf %232, %233 : vector<1x128xf32>
    %235 = vector.extract_strided_slice %234 {offsets = [0, 0], sizes = [1, 96], strides = [1, 1]} : vector<1x128xf32> to vector<1x96xf32>
    %236 = arith.negf %235 : vector<1x96xf32>
    %237 = math.exp %236 : vector<1x96xf32>
    %cst_75 = arith.constant 1.000000e+00 : f32
    %238 = vector.broadcast %cst_75 : f32 to vector<1x96xf32>
    %239 = arith.addf %238, %237 : vector<1x96xf32>
    %240 = arith.divf %238, %239 : vector<1x96xf32>
    %241 = vector.extract_strided_slice %234 {offsets = [0, 96], sizes = [1, 32], strides = [1, 1]} : vector<1x128xf32> to vector<1x32xf32>
    %242 = math.tanh %241 : vector<1x32xf32>
    %243 = vector.extract_strided_slice %240 {offsets = [0, 32], sizes = [1, 32], strides = [1, 1]} : vector<1x96xf32> to vector<1x32xf32>
    %244 = arith.mulf %243, %229 : vector<1x32xf32>
    %245 = vector.extract_strided_slice %240 {offsets = [0, 0], sizes = [1, 32], strides = [1, 1]} : vector<1x96xf32> to vector<1x32xf32>
    %246 = arith.mulf %245, %242 : vector<1x32xf32>
    %247 = arith.addf %244, %246 : vector<1x32xf32>
    %248 = vector.extract_strided_slice %240 {offsets = [0, 64], sizes = [1, 32], strides = [1, 1]} : vector<1x96xf32> to vector<1x32xf32>
    %249 = math.tanh %247 : vector<1x32xf32>
    %250 = arith.mulf %248, %249 : vector<1x32xf32>
    %251 = vector.extract_strided_slice %250 {offsets = [0, 0], sizes = [1, 16], strides = [1, 1]} : vector<1x32xf32> to vector<1x16xf32>
    %c0_76 = arith.constant 0 : index
    %c0_77 = arith.constant 0 : index
    %252 = vector.load %arg9[%c0_76, %c0_77] : memref<8x32xf32, #tpu.memory_space<vmem>>, vector<1x16xf32>
    tpu.vector_store %arg9[%c0_76, %c0_77], %251 {strides = array<i32>} : memref<8x32xf32, #tpu.memory_space<vmem>>, vector<1x16xf32>,
    %253 = vector.extract_strided_slice %250 {offsets = [0, 16], sizes = [1, 16], strides = [1, 1]} : vector<1x32xf32> to vector<1x16xf32>
    %c7_78 = arith.constant 7 : index
    %c16_79 = arith.constant 16 : index
    %254 = vector.load %arg9[%c7_78, %c16_79] : memref<8x32xf32, #tpu.memory_space<vmem>>, vector<1x16xf32>
    tpu.vector_store %arg9[%c7_78, %c16_79], %253 {strides = array<i32>} : memref<8x32xf32, #tpu.memory_space<vmem>>, vector<1x16xf32>,
    %255 = vector.extract_strided_slice %225 {offsets = [1, 0], sizes = [1, 128], strides = [1, 1]} : vector<8x128xf32> to vector<1x128xf32>
    %256 = vector.extract_strided_slice %221 {offsets = [6, 0], sizes = [1, 128], strides = [1, 1]} : vector<8x128xf32> to vector<1x128xf32>
    %257 = arith.addf %255, %256 : vector<1x128xf32>
    %cst_80 = arith.constant dense<0.000000e+00> : vector<1x128xf32>
    %258 = tpu.matmul %250, %227, %cst_80 {dimension_numbers = #tpu.dot_dimension_numbers<[1], [0], [0], [1], [0, 0, 1, 1], [], []>} : vector<1x32xf32>, vector<32x128xf32>, vector<1x128xf32> -> vector<1x128xf32>
    %259 = arith.addf %257, %258 : vector<1x128xf32>
    %260 = vector.extract_strided_slice %259 {offsets = [0, 0], sizes = [1, 96], strides = [1, 1]} : vector<1x128xf32> to vector<1x96xf32>
    %261 = arith.negf %260 : vector<1x96xf32>
    %262 = math.exp %261 : vector<1x96xf32>
    %cst_81 = arith.constant 1.000000e+00 : f32
    %263 = vector.broadcast %cst_81 : f32 to vector<1x96xf32>
    %264 = arith.addf %263, %262 : vector<1x96xf32>
    %265 = arith.divf %263, %264 : vector<1x96xf32>
    %266 = vector.extract_strided_slice %259 {offsets = [0, 96], sizes = [1, 32], strides = [1, 1]} : vector<1x128xf32> to vector<1x32xf32>
    %267 = math.tanh %266 : vector<1x32xf32>
    %268 = vector.extract_strided_slice %265 {offsets = [0, 32], sizes = [1, 32], strides = [1, 1]} : vector<1x96xf32> to vector<1x32xf32>
    %269 = arith.mulf %268, %247 : vector<1x32xf32>
    %270 = vector.extract_strided_slice %265 {offsets = [0, 0], sizes = [1, 32], strides = [1, 1]} : vector<1x96xf32> to vector<1x32xf32>
    %271 = arith.mulf %270, %267 : vector<1x32xf32>
    %272 = arith.addf %269, %271 : vector<1x32xf32>
    %273 = vector.extract_strided_slice %265 {offsets = [0, 64], sizes = [1, 32], strides = [1, 1]} : vector<1x96xf32> to vector<1x32xf32>
    %274 = math.tanh %272 : vector<1x32xf32>
    %275 = arith.mulf %273, %274 : vector<1x32xf32>
    %276 = vector.extract_strided_slice %275 {offsets = [0, 0], sizes = [1, 16], strides = [1, 1]} : vector<1x32xf32> to vector<1x16xf32>
    %c1_82 = arith.constant 1 : index
    %c0_83 = arith.constant 0 : index
    %277 = vector.load %arg9[%c1_82, %c0_83] : memref<8x32xf32, #tpu.memory_space<vmem>>, vector<1x16xf32>
    tpu.vector_store %arg9[%c1_82, %c0_83], %276 {strides = array<i32>} : memref<8x32xf32, #tpu.memory_space<vmem>>, vector<1x16xf32>,
    %278 = vector.extract_strided_slice %275 {offsets = [0, 16], sizes = [1, 16], strides = [1, 1]} : vector<1x32xf32> to vector<1x16xf32>
    %c6_84 = arith.constant 6 : index
    %c16_85 = arith.constant 16 : index
    %279 = vector.load %arg9[%c6_84, %c16_85] : memref<8x32xf32, #tpu.memory_space<vmem>>, vector<1x16xf32>
    tpu.vector_store %arg9[%c6_84, %c16_85], %278 {strides = array<i32>} : memref<8x32xf32, #tpu.memory_space<vmem>>, vector<1x16xf32>,
    %280 = vector.extract_strided_slice %225 {offsets = [2, 0], sizes = [1, 128], strides = [1, 1]} : vector<8x128xf32> to vector<1x128xf32>
    %281 = vector.extract_strided_slice %221 {offsets = [5, 0], sizes = [1, 128], strides = [1, 1]} : vector<8x128xf32> to vector<1x128xf32>
    %282 = arith.addf %280, %281 : vector<1x128xf32>
    %cst_86 = arith.constant dense<0.000000e+00> : vector<1x128xf32>
    %283 = tpu.matmul %275, %227, %cst_86 {dimension_numbers = #tpu.dot_dimension_numbers<[1], [0], [0], [1], [0, 0, 1, 1], [], []>} : vector<1x32xf32>, vector<32x128xf32>, vector<1x128xf32> -> vector<1x128xf32>
    %284 = arith.addf %282, %283 : vector<1x128xf32>
    %285 = vector.extract_strided_slice %284 {offsets = [0, 0], sizes = [1, 96], strides = [1, 1]} : vector<1x128xf32> to vector<1x96xf32>
    %286 = arith.negf %285 : vector<1x96xf32>
    %287 = math.exp %286 : vector<1x96xf32>
    %cst_87 = arith.constant 1.000000e+00 : f32
    %288 = vector.broadcast %cst_87 : f32 to vector<1x96xf32>
    %289 = arith.addf %288, %287 : vector<1x96xf32>
    %290 = arith.divf %288, %289 : vector<1x96xf32>
    %291 = vector.extract_strided_slice %284 {offsets = [0, 96], sizes = [1, 32], strides = [1, 1]} : vector<1x128xf32> to vector<1x32xf32>
    %292 = math.tanh %291 : vector<1x32xf32>
    %293 = vector.extract_strided_slice %290 {offsets = [0, 32], sizes = [1, 32], strides = [1, 1]} : vector<1x96xf32> to vector<1x32xf32>
    %294 = arith.mulf %293, %272 : vector<1x32xf32>
    %295 = vector.extract_strided_slice %290 {offsets = [0, 0], sizes = [1, 32], strides = [1, 1]} : vector<1x96xf32> to vector<1x32xf32>
    %296 = arith.mulf %295, %292 : vector<1x32xf32>
    %297 = arith.addf %294, %296 : vector<1x32xf32>
    %298 = vector.extract_strided_slice %290 {offsets = [0, 64], sizes = [1, 32], strides = [1, 1]} : vector<1x96xf32> to vector<1x32xf32>
    %299 = math.tanh %297 : vector<1x32xf32>
    %300 = arith.mulf %298, %299 : vector<1x32xf32>
    %301 = vector.extract_strided_slice %300 {offsets = [0, 0], sizes = [1, 16], strides = [1, 1]} : vector<1x32xf32> to vector<1x16xf32>
    %c2_88 = arith.constant 2 : index
    %c0_89 = arith.constant 0 : index
    %302 = vector.load %arg9[%c2_88, %c0_89] : memref<8x32xf32, #tpu.memory_space<vmem>>, vector<1x16xf32>
    tpu.vector_store %arg9[%c2_88, %c0_89], %301 {strides = array<i32>} : memref<8x32xf32, #tpu.memory_space<vmem>>, vector<1x16xf32>,
    %303 = vector.extract_strided_slice %300 {offsets = [0, 16], sizes = [1, 16], strides = [1, 1]} : vector<1x32xf32> to vector<1x16xf32>
    %c5_90 = arith.constant 5 : index
    %c16_91 = arith.constant 16 : index
    %304 = vector.load %arg9[%c5_90, %c16_91] : memref<8x32xf32, #tpu.memory_space<vmem>>, vector<1x16xf32>
    tpu.vector_store %arg9[%c5_90, %c16_91], %303 {strides = array<i32>} : memref<8x32xf32, #tpu.memory_space<vmem>>, vector<1x16xf32>,
    %305 = vector.extract_strided_slice %225 {offsets = [3, 0], sizes = [1, 128], strides = [1, 1]} : vector<8x128xf32> to vector<1x128xf32>
    %306 = vector.extract_strided_slice %221 {offsets = [4, 0], sizes = [1, 128], strides = [1, 1]} : vector<8x128xf32> to vector<1x128xf32>
    %307 = arith.addf %305, %306 : vector<1x128xf32>
    %cst_92 = arith.constant dense<0.000000e+00> : vector<1x128xf32>
    %308 = tpu.matmul %300, %227, %cst_92 {dimension_numbers = #tpu.dot_dimension_numbers<[1], [0], [0], [1], [0, 0, 1, 1], [], []>} : vector<1x32xf32>, vector<32x128xf32>, vector<1x128xf32> -> vector<1x128xf32>
    %309 = arith.addf %307, %308 : vector<1x128xf32>
    %310 = vector.extract_strided_slice %309 {offsets = [0, 0], sizes = [1, 96], strides = [1, 1]} : vector<1x128xf32> to vector<1x96xf32>
    %311 = arith.negf %310 : vector<1x96xf32>
    %312 = math.exp %311 : vector<1x96xf32>
    %cst_93 = arith.constant 1.000000e+00 : f32
    %313 = vector.broadcast %cst_93 : f32 to vector<1x96xf32>
    %314 = arith.addf %313, %312 : vector<1x96xf32>
    %315 = arith.divf %313, %314 : vector<1x96xf32>
    %316 = vector.extract_strided_slice %309 {offsets = [0, 96], sizes = [1, 32], strides = [1, 1]} : vector<1x128xf32> to vector<1x32xf32>
    %317 = math.tanh %316 : vector<1x32xf32>
    %318 = vector.extract_strided_slice %315 {offsets = [0, 32], sizes = [1, 32], strides = [1, 1]} : vector<1x96xf32> to vector<1x32xf32>
    %319 = arith.mulf %318, %297 : vector<1x32xf32>
    %320 = vector.extract_strided_slice %315 {offsets = [0, 0], sizes = [1, 32], strides = [1, 1]} : vector<1x96xf32> to vector<1x32xf32>
    %321 = arith.mulf %320, %317 : vector<1x32xf32>
    %322 = arith.addf %319, %321 : vector<1x32xf32>
    %323 = vector.extract_strided_slice %315 {offsets = [0, 64], sizes = [1, 32], strides = [1, 1]} : vector<1x96xf32> to vector<1x32xf32>
    %324 = math.tanh %322 : vector<1x32xf32>
    %325 = arith.mulf %323, %324 : vector<1x32xf32>
    %326 = vector.extract_strided_slice %325 {offsets = [0, 0], sizes = [1, 16], strides = [1, 1]} : vector<1x32xf32> to vector<1x16xf32>
    %c3_94 = arith.constant 3 : index
    %c0_95 = arith.constant 0 : index
    %327 = vector.load %arg9[%c3_94, %c0_95] : memref<8x32xf32, #tpu.memory_space<vmem>>, vector<1x16xf32>
    tpu.vector_store %arg9[%c3_94, %c0_95], %326 {strides = array<i32>} : memref<8x32xf32, #tpu.memory_space<vmem>>, vector<1x16xf32>,
    %328 = vector.extract_strided_slice %325 {offsets = [0, 16], sizes = [1, 16], strides = [1, 1]} : vector<1x32xf32> to vector<1x16xf32>
    %c4_96 = arith.constant 4 : index
    %c16_97 = arith.constant 16 : index
    %329 = vector.load %arg9[%c4_96, %c16_97] : memref<8x32xf32, #tpu.memory_space<vmem>>, vector<1x16xf32>
    tpu.vector_store %arg9[%c4_96, %c16_97], %328 {strides = array<i32>} : memref<8x32xf32, #tpu.memory_space<vmem>>, vector<1x16xf32>,
    %330 = vector.extract_strided_slice %225 {offsets = [4, 0], sizes = [1, 128], strides = [1, 1]} : vector<8x128xf32> to vector<1x128xf32>
    %331 = vector.extract_strided_slice %221 {offsets = [3, 0], sizes = [1, 128], strides = [1, 1]} : vector<8x128xf32> to vector<1x128xf32>
    %332 = arith.addf %330, %331 : vector<1x128xf32>
    %cst_98 = arith.constant dense<0.000000e+00> : vector<1x128xf32>
    %333 = tpu.matmul %325, %227, %cst_98 {dimension_numbers = #tpu.dot_dimension_numbers<[1], [0], [0], [1], [0, 0, 1, 1], [], []>} : vector<1x32xf32>, vector<32x128xf32>, vector<1x128xf32> -> vector<1x128xf32>
    %334 = arith.addf %332, %333 : vector<1x128xf32>
    %335 = vector.extract_strided_slice %334 {offsets = [0, 0], sizes = [1, 96], strides = [1, 1]} : vector<1x128xf32> to vector<1x96xf32>
    %336 = arith.negf %335 : vector<1x96xf32>
    %337 = math.exp %336 : vector<1x96xf32>
    %cst_99 = arith.constant 1.000000e+00 : f32
    %338 = vector.broadcast %cst_99 : f32 to vector<1x96xf32>
    %339 = arith.addf %338, %337 : vector<1x96xf32>
    %340 = arith.divf %338, %339 : vector<1x96xf32>
    %341 = vector.extract_strided_slice %334 {offsets = [0, 96], sizes = [1, 32], strides = [1, 1]} : vector<1x128xf32> to vector<1x32xf32>
    %342 = math.tanh %341 : vector<1x32xf32>
    %343 = vector.extract_strided_slice %340 {offsets = [0, 32], sizes = [1, 32], strides = [1, 1]} : vector<1x96xf32> to vector<1x32xf32>
    %344 = arith.mulf %343, %322 : vector<1x32xf32>
    %345 = vector.extract_strided_slice %340 {offsets = [0, 0], sizes = [1, 32], strides = [1, 1]} : vector<1x96xf32> to vector<1x32xf32>
    %346 = arith.mulf %345, %342 : vector<1x32xf32>
    %347 = arith.addf %344, %346 : vector<1x32xf32>
    %348 = vector.extract_strided_slice %340 {offsets = [0, 64], sizes = [1, 32], strides = [1, 1]} : vector<1x96xf32> to vector<1x32xf32>
    %349 = math.tanh %347 : vector<1x32xf32>
    %350 = arith.mulf %348, %349 : vector<1x32xf32>
    %351 = vector.extract_strided_slice %350 {offsets = [0, 0], sizes = [1, 16], strides = [1, 1]} : vector<1x32xf32> to vector<1x16xf32>
    %c4_100 = arith.constant 4 : index
    %c0_101 = arith.constant 0 : index
    %352 = vector.load %arg9[%c4_100, %c0_101] : memref<8x32xf32, #tpu.memory_space<vmem>>, vector<1x16xf32>
    tpu.vector_store %arg9[%c4_100, %c0_101], %351 {strides = array<i32>} : memref<8x32xf32, #tpu.memory_space<vmem>>, vector<1x16xf32>,
    %353 = vector.extract_strided_slice %350 {offsets = [0, 16], sizes = [1, 16], strides = [1, 1]} : vector<1x32xf32> to vector<1x16xf32>
    %c3_102 = arith.constant 3 : index
    %c16_103 = arith.constant 16 : index
    %354 = vector.load %arg9[%c3_102, %c16_103] : memref<8x32xf32, #tpu.memory_space<vmem>>, vector<1x16xf32>
    tpu.vector_store %arg9[%c3_102, %c16_103], %353 {strides = array<i32>} : memref<8x32xf32, #tpu.memory_space<vmem>>, vector<1x16xf32>,
    %355 = vector.extract_strided_slice %225 {offsets = [5, 0], sizes = [1, 128], strides = [1, 1]} : vector<8x128xf32> to vector<1x128xf32>
    %356 = vector.extract_strided_slice %221 {offsets = [2, 0], sizes = [1, 128], strides = [1, 1]} : vector<8x128xf32> to vector<1x128xf32>
    %357 = arith.addf %355, %356 : vector<1x128xf32>
    %cst_104 = arith.constant dense<0.000000e+00> : vector<1x128xf32>
    %358 = tpu.matmul %350, %227, %cst_104 {dimension_numbers = #tpu.dot_dimension_numbers<[1], [0], [0], [1], [0, 0, 1, 1], [], []>} : vector<1x32xf32>, vector<32x128xf32>, vector<1x128xf32> -> vector<1x128xf32>
    %359 = arith.addf %357, %358 : vector<1x128xf32>
    %360 = vector.extract_strided_slice %359 {offsets = [0, 0], sizes = [1, 96], strides = [1, 1]} : vector<1x128xf32> to vector<1x96xf32>
    %361 = arith.negf %360 : vector<1x96xf32>
    %362 = math.exp %361 : vector<1x96xf32>
    %cst_105 = arith.constant 1.000000e+00 : f32
    %363 = vector.broadcast %cst_105 : f32 to vector<1x96xf32>
    %364 = arith.addf %363, %362 : vector<1x96xf32>
    %365 = arith.divf %363, %364 : vector<1x96xf32>
    %366 = vector.extract_strided_slice %359 {offsets = [0, 96], sizes = [1, 32], strides = [1, 1]} : vector<1x128xf32> to vector<1x32xf32>
    %367 = math.tanh %366 : vector<1x32xf32>
    %368 = vector.extract_strided_slice %365 {offsets = [0, 32], sizes = [1, 32], strides = [1, 1]} : vector<1x96xf32> to vector<1x32xf32>
    %369 = arith.mulf %368, %347 : vector<1x32xf32>
    %370 = vector.extract_strided_slice %365 {offsets = [0, 0], sizes = [1, 32], strides = [1, 1]} : vector<1x96xf32> to vector<1x32xf32>
    %371 = arith.mulf %370, %367 : vector<1x32xf32>
    %372 = arith.addf %369, %371 : vector<1x32xf32>
    %373 = vector.extract_strided_slice %365 {offsets = [0, 64], sizes = [1, 32], strides = [1, 1]} : vector<1x96xf32> to vector<1x32xf32>
    %374 = math.tanh %372 : vector<1x32xf32>
    %375 = arith.mulf %373, %374 : vector<1x32xf32>
    %376 = vector.extract_strided_slice %375 {offsets = [0, 0], sizes = [1, 16], strides = [1, 1]} : vector<1x32xf32> to vector<1x16xf32>
    %c5_106 = arith.constant 5 : index
    %c0_107 = arith.constant 0 : index
    %377 = vector.load %arg9[%c5_106, %c0_107] : memref<8x32xf32, #tpu.memory_space<vmem>>, vector<1x16xf32>
    tpu.vector_store %arg9[%c5_106, %c0_107], %376 {strides = array<i32>} : memref<8x32xf32, #tpu.memory_space<vmem>>, vector<1x16xf32>,
    %378 = vector.extract_strided_slice %375 {offsets = [0, 16], sizes = [1, 16], strides = [1, 1]} : vector<1x32xf32> to vector<1x16xf32>
    %c2_108 = arith.constant 2 : index
    %c16_109 = arith.constant 16 : index
    %379 = vector.load %arg9[%c2_108, %c16_109] : memref<8x32xf32, #tpu.memory_space<vmem>>, vector<1x16xf32>
    tpu.vector_store %arg9[%c2_108, %c16_109], %378 {strides = array<i32>} : memref<8x32xf32, #tpu.memory_space<vmem>>, vector<1x16xf32>,
    %380 = vector.extract_strided_slice %225 {offsets = [6, 0], sizes = [1, 128], strides = [1, 1]} : vector<8x128xf32> to vector<1x128xf32>
    %381 = vector.extract_strided_slice %221 {offsets = [1, 0], sizes = [1, 128], strides = [1, 1]} : vector<8x128xf32> to vector<1x128xf32>
    %382 = arith.addf %380, %381 : vector<1x128xf32>
    %cst_110 = arith.constant dense<0.000000e+00> : vector<1x128xf32>
    %383 = tpu.matmul %375, %227, %cst_110 {dimension_numbers = #tpu.dot_dimension_numbers<[1], [0], [0], [1], [0, 0, 1, 1], [], []>} : vector<1x32xf32>, vector<32x128xf32>, vector<1x128xf32> -> vector<1x128xf32>
    %384 = arith.addf %382, %383 : vector<1x128xf32>
    %385 = vector.extract_strided_slice %384 {offsets = [0, 0], sizes = [1, 96], strides = [1, 1]} : vector<1x128xf32> to vector<1x96xf32>
    %386 = arith.negf %385 : vector<1x96xf32>
    %387 = math.exp %386 : vector<1x96xf32>
    %cst_111 = arith.constant 1.000000e+00 : f32
    %388 = vector.broadcast %cst_111 : f32 to vector<1x96xf32>
    %389 = arith.addf %388, %387 : vector<1x96xf32>
    %390 = arith.divf %388, %389 : vector<1x96xf32>
    %391 = vector.extract_strided_slice %384 {offsets = [0, 96], sizes = [1, 32], strides = [1, 1]} : vector<1x128xf32> to vector<1x32xf32>
    %392 = math.tanh %391 : vector<1x32xf32>
    %393 = vector.extract_strided_slice %390 {offsets = [0, 32], sizes = [1, 32], strides = [1, 1]} : vector<1x96xf32> to vector<1x32xf32>
    %394 = arith.mulf %393, %372 : vector<1x32xf32>
    %395 = vector.extract_strided_slice %390 {offsets = [0, 0], sizes = [1, 32], strides = [1, 1]} : vector<1x96xf32> to vector<1x32xf32>
    %396 = arith.mulf %395, %392 : vector<1x32xf32>
    %397 = arith.addf %394, %396 : vector<1x32xf32>
    %398 = vector.extract_strided_slice %390 {offsets = [0, 64], sizes = [1, 32], strides = [1, 1]} : vector<1x96xf32> to vector<1x32xf32>
    %399 = math.tanh %397 : vector<1x32xf32>
    %400 = arith.mulf %398, %399 : vector<1x32xf32>
    %401 = vector.extract_strided_slice %400 {offsets = [0, 0], sizes = [1, 16], strides = [1, 1]} : vector<1x32xf32> to vector<1x16xf32>
    %c6_112 = arith.constant 6 : index
    %c0_113 = arith.constant 0 : index
    %402 = vector.load %arg9[%c6_112, %c0_113] : memref<8x32xf32, #tpu.memory_space<vmem>>, vector<1x16xf32>
    tpu.vector_store %arg9[%c6_112, %c0_113], %401 {strides = array<i32>} : memref<8x32xf32, #tpu.memory_space<vmem>>, vector<1x16xf32>,
    %403 = vector.extract_strided_slice %400 {offsets = [0, 16], sizes = [1, 16], strides = [1, 1]} : vector<1x32xf32> to vector<1x16xf32>
    %c1_114 = arith.constant 1 : index
    %c16_115 = arith.constant 16 : index
    %404 = vector.load %arg9[%c1_114, %c16_115] : memref<8x32xf32, #tpu.memory_space<vmem>>, vector<1x16xf32>
    tpu.vector_store %arg9[%c1_114, %c16_115], %403 {strides = array<i32>} : memref<8x32xf32, #tpu.memory_space<vmem>>, vector<1x16xf32>,
    %405 = vector.extract_strided_slice %225 {offsets = [7, 0], sizes = [1, 128], strides = [1, 1]} : vector<8x128xf32> to vector<1x128xf32>
    %406 = vector.extract_strided_slice %221 {offsets = [0, 0], sizes = [1, 128], strides = [1, 1]} : vector<8x128xf32> to vector<1x128xf32>
    %407 = arith.addf %405, %406 : vector<1x128xf32>
    %cst_116 = arith.constant dense<0.000000e+00> : vector<1x128xf32>
    %408 = tpu.matmul %400, %227, %cst_116 {dimension_numbers = #tpu.dot_dimension_numbers<[1], [0], [0], [1], [0, 0, 1, 1], [], []>} : vector<1x32xf32>, vector<32x128xf32>, vector<1x128xf32> -> vector<1x128xf32>
    %409 = arith.addf %407, %408 : vector<1x128xf32>
    %410 = vector.extract_strided_slice %409 {offsets = [0, 0], sizes = [1, 96], strides = [1, 1]} : vector<1x128xf32> to vector<1x96xf32>
    %411 = arith.negf %410 : vector<1x96xf32>
    %412 = math.exp %411 : vector<1x96xf32>
    %cst_117 = arith.constant 1.000000e+00 : f32
    %413 = vector.broadcast %cst_117 : f32 to vector<1x96xf32>
    %414 = arith.addf %413, %412 : vector<1x96xf32>
    %415 = arith.divf %413, %414 : vector<1x96xf32>
    %416 = vector.extract_strided_slice %409 {offsets = [0, 96], sizes = [1, 32], strides = [1, 1]} : vector<1x128xf32> to vector<1x32xf32>
    %417 = math.tanh %416 : vector<1x32xf32>
    %418 = vector.extract_strided_slice %415 {offsets = [0, 32], sizes = [1, 32], strides = [1, 1]} : vector<1x96xf32> to vector<1x32xf32>
    %419 = arith.mulf %418, %397 : vector<1x32xf32>
    %420 = vector.extract_strided_slice %415 {offsets = [0, 0], sizes = [1, 32], strides = [1, 1]} : vector<1x96xf32> to vector<1x32xf32>
    %421 = arith.mulf %420, %417 : vector<1x32xf32>
    %422 = arith.addf %419, %421 : vector<1x32xf32>
    %423 = vector.extract_strided_slice %415 {offsets = [0, 64], sizes = [1, 32], strides = [1, 1]} : vector<1x96xf32> to vector<1x32xf32>
    %424 = math.tanh %422 : vector<1x32xf32>
    %425 = arith.mulf %423, %424 : vector<1x32xf32>
    %426 = vector.extract_strided_slice %425 {offsets = [0, 0], sizes = [1, 16], strides = [1, 1]} : vector<1x32xf32> to vector<1x16xf32>
    %c7_118 = arith.constant 7 : index
    %c0_119 = arith.constant 0 : index
    %427 = vector.load %arg9[%c7_118, %c0_119] : memref<8x32xf32, #tpu.memory_space<vmem>>, vector<1x16xf32>
    tpu.vector_store %arg9[%c7_118, %c0_119], %426 {strides = array<i32>} : memref<8x32xf32, #tpu.memory_space<vmem>>, vector<1x16xf32>,
    %428 = vector.extract_strided_slice %425 {offsets = [0, 16], sizes = [1, 16], strides = [1, 1]} : vector<1x32xf32> to vector<1x16xf32>
    %c0_120 = arith.constant 0 : index
    %c16_121 = arith.constant 16 : index
    %429 = vector.load %arg9[%c0_120, %c16_121] : memref<8x32xf32, #tpu.memory_space<vmem>>, vector<1x16xf32>
    tpu.vector_store %arg9[%c0_120, %c16_121], %428 {strides = array<i32>} : memref<8x32xf32, #tpu.memory_space<vmem>>, vector<1x16xf32>,
    %c0_122 = arith.constant 0 : index
    %c0_123 = arith.constant 0 : index
    %430 = vector.load %arg9[%c0_122, %c0_123] : memref<8x32xf32, #tpu.memory_space<vmem>>, vector<8x32xf32>
    %c0_124 = arith.constant 0 : index
    %c0_125 = arith.constant 0 : index
    %431 = vector.load %arg4[%c0_124, %c0_125] : memref<32x32xf32, #tpu.memory_space<vmem>>, vector<32x32xf32>
    %cst_126 = arith.constant dense<0.000000e+00> : vector<8x32xf32>
    %432 = tpu.matmul %430, %431, %cst_126 {dimension_numbers = #tpu.dot_dimension_numbers<[1], [0], [0], [1], [0, 0, 1, 1], [], []>} : vector<8x32xf32>, vector<32x32xf32>, vector<8x32xf32> -> vector<8x32xf32>
    %c0_127 = arith.constant 0 : index
    %c0_128 = arith.constant 0 : index
    %433 = vector.load %arg5[%c0_127, %c0_128] : memref<1x32xf32, #tpu.memory_space<vmem>>, vector<1x32xf32>
    %434 = vector.broadcast %433 : vector<1x32xf32> to vector<8x32xf32>
    %435 = arith.addf %432, %434 : vector<8x32xf32>
    %cst_129 = arith.constant 0.000000e+00 : f32
    %436 = vector.broadcast %cst_129 : f32 to vector<8x32xf32>
    %437 = arith.maximumf %435, %436 : vector<8x32xf32>
    %c0_130 = arith.constant 0 : index
    %c0_131 = arith.constant 0 : index
    %438 = vector.load %arg6[%c0_130, %c0_131] : memref<32x32xf32, #tpu.memory_space<vmem>>, vector<32x32xf32>
    %cst_132 = arith.constant dense<0.000000e+00> : vector<8x32xf32>
    %439 = tpu.matmul %437, %438, %cst_132 {dimension_numbers = #tpu.dot_dimension_numbers<[1], [0], [0], [1], [0, 0, 1, 1], [], []>} : vector<8x32xf32>, vector<32x32xf32>, vector<8x32xf32> -> vector<8x32xf32>
    %c0_133 = arith.constant 0 : index
    %c0_134 = arith.constant 0 : index
    %440 = vector.load %arg7[%c0_133, %c0_134] : memref<1x32xf32, #tpu.memory_space<vmem>>, vector<1x32xf32>
    %441 = vector.broadcast %440 : vector<1x32xf32> to vector<8x32xf32>
    %442 = arith.addf %439, %441 : vector<8x32xf32>
    %c0_135 = arith.constant 0 : index
    %c0_136 = arith.constant 0 : index
    %443 = vector.load %arg8[%c0_135, %c0_136] : memref<8x32xf32, #tpu.memory_space<vmem>>, vector<8x32xf32>
    tpu.vector_store %arg8[%c0_135, %c0_136], %442 {strides = array<i32>} : memref<8x32xf32, #tpu.memory_space<vmem>>, vector<8x32xf32>,
    return
  }
}

</mosaic_0001>

<bundles_post_ra>
// kernel: tpu_custom_call.1
= control target key start
LH: loop header
LB: loop body
LE: loop exit
PB: predicated region body
PF: predicated region fallthrough
CT: control target
= control target key end

     0   :  { %13 = vsyncpa [#allocation4], 0  ;;  %s2178_s0 = inlined_call_operand.hbm [shape: f32[8,32], index: 0, kind: input, shape index: {}]   ;;  %s2179_s1 = inlined_call_operand.hbm [shape: f32[4,32,128], index: 1, kind: input, shape index: {}]   ;;  %s2180_s2 = inlined_call_operand.hbm [shape: f32[2,32,128], index: 2, kind: input, shape index: {}]   ;;  %s2181_s3 = inlined_call_operand.vmem [shape: f32[2,1,128], index: 3, kind: input, shape index: {}]   ;;  %s2182_s4 = inlined_call_operand.hbm [shape: f32[32,32], index: 4, kind: input, shape index: {}]   ;;  %s2183_s5 = inlined_call_operand.vmem [shape: f32[1,32], index: 5, kind: input, shape index: {}]   ;;  %s2184_s6 = inlined_call_operand.hbm [shape: f32[32,32], index: 6, kind: input, shape index: {}]   ;;  %s2185_s7 = inlined_call_operand.vmem [shape: f32[1,32], index: 7, kind: input, shape index: {}]   ;;  %s2186_s8 = inlined_call_operand.hbm [shape: f32[8,32], index: 8, kind: output, shape index: {}]  }
   0x1   :  { %14 = vsyncpa [#allocation7], 0 }
   0x2   :  { %15 = vsyncpa [#allocation10], 0  ;;  %s32_s29 = sshll.u32 %s2179_s1, 4  ;;  %s33_s29 = int_to_ptr.hbm [resolvable:$true] %s32_s29 }
   0x3   :  { %16 = vsyncpa [#allocation5], 0  ;;  %s1865_s30 = smov [#allocation6]   ;;  %s60_s12 = sshll.u32 %s2182_s4, 4  ;;  %s61_s12 = int_to_ptr.hbm [resolvable:$true] %s60_s12 }
   0x4   :  { %s34_s9 = sshll.u32 %s1865_s30, 4  ;;  %s1866_s13 = smov 128   ;;  %s35_s9 = int_to_ptr.vmem [resolvable:$true] %s34_s9 }
   0x5   :  { %s1867_s14 = smov 8   ;;  %s1868_s15 = smov [#allocation9]  }
   0x6   :  { %40 = dma.hbm_to_vmem [thread:$0]  %s33_s29, 2048, %s35_s9, [#allocation7], %s1866_s13, %s1866_s13, %s1867_s14  }
   0x7   :  { %s62_s16 = sshll.u32 %s1868_s15, 4  ;;  %s22_s19 = sshll.u32 %s2178_s0, 4  ;;  %s63_s16 = int_to_ptr.vmem [resolvable:$true] %s62_s16  ;;  %s23_s19 = int_to_ptr.hbm [resolvable:$true] %s22_s19 }
   0x8   :  { %68 = dma.hbm_to_vmem [thread:$0]  %s61_s12, 512, %s63_s16, [#allocation10], %s1866_s13, %s1866_s13, %s1867_s14  }
   0x9   :  { %s45_s21 = sshll.u32 %s2180_s2, 4  ;;  %s1869_s22 = smov [#allocation3]   ;;  %s46_s21 = int_to_ptr.hbm [resolvable:$true] %s45_s21 }
   0xa   :  { %s24_s23 = sshll.u32 %s1869_s22, 4  ;;  %s1870_s4 = smov [#allocation8]   ;;  %s25_s23 = int_to_ptr.vmem [resolvable:$true] %s24_s23 }
   0xb   :  { %27 = dma.hbm_to_vmem [thread:$0]  %s23_s19, 128, %s25_s23, [#allocation4]  }
   0xc   :  { %s47_s24 = sshll.u32 %s1870_s4, 4  ;;  %s75_s27 = sshll.u32 %s2184_s6, 4  ;;  %s48_s24 = int_to_ptr.vmem [resolvable:$true] %s47_s24  ;;  %s76_s27 = int_to_ptr.hbm [resolvable:$true] %s75_s27 }
   0xd   :  { %53 = dma.hbm_to_vmem [thread:$0]  %s46_s21, 1024, %s48_s24, [#allocation7], %s1866_s13, %s1866_s13, %s1867_s14  }
   0xe   :  { %s1871_s0 = smov [#allocation11]  }
   0xf   :  { %s77_s28 = sshll.u32 %s1871_s0, 4  ;;  %s78_s28 = int_to_ptr.vmem [resolvable:$true] %s77_s28 }
  0x10   :  { %83 = dma.hbm_to_vmem [thread:$0]  %s76_s27, 512, %s78_s28, [#allocation10], %s1866_s13, %s1866_s13, %s1867_s14  }
  0x11   :  { %1857 = dma.done.wait [#allocation4], 128  }
  0x12   :  { %1858 = vsyncadd [#allocation4], 4294967168 }
  0x13   :  { %1859 = dma.done.wait [#allocation7], 3072  }
  0x14   :  { %1860 = vsyncadd [#allocation7], 4294964224 }
  0x15   :  { %1861 = dma.done.wait [#allocation10], 1024  }
  0x16   :  { %1862 = vsyncadd [#allocation10], 4294966272  ;;  %v167_v0 = vld [vmem:[#allocation8 + $0x18] sm:$0xff]  ;;  %v166_v3 = vld [vmem:[#allocation8 + $0x10] sm:$0xff]  ;;  %vm116_vm0 = vcmask 261120   ;;  %v1872_v13 = vmov 0.0  }
  0x17   :  { %v115_v1 = vld [vmem:[#allocation6 + $0x38] sm:$0xff]  ;;  %187 = vmatpush.msra.mxu2 %v167_v0  ;;  %v114_v4 = vld [vmem:[#allocation6 + $0x30] sm:$0xff]  ;;  %v165_v6 = vld [vmem:[#allocation8 + $0x8] sm:$0xff]  ;;  %258 = vmatpush.msra.mxu3 %v167_v0  ;;  %s1873_s29 = smov 32   ;;  %s1874_s30 = smov 64   ;;  %vm237_vm5 = vcmask 122880  }
  0x18   :  { %v110_v2 = vld [vmem:[#allocation6 + $0x18] sm:$0xff]  ;;  %132 = vmatpush.msra.mxu0 %v115_v1  ;;  %v109_v5 = vld [vmem:[#allocation6 + $0x10] sm:$0xff]  ;;  %v113_v7 = vld [vmem:[#allocation6 + $0x28] sm:$0xff]  ;;  %vm239_vm6 = vcmask 254080   ;;  %s1875_s14 = smov [#allocation12]   ;;  %s1521_s18 = sshll.u32 %s2186_s8, 4  ;;  %s1522_s18 = int_to_ptr.hbm [resolvable:$true] %s1521_s18 }
  0x19   :  { %156 = vmatpush.msra.mxu1 %v110_v2  ;;  %188 = vmatpush.msra.mxu2 %v166_v3  ;;  %v108_v8 = vld [vmem:[#allocation6 + $0x8] sm:$0xff]  ;;  %v164_v9 = vld [vmem:[#allocation8] sm:$0xff]  ;;  %v106_v12 = vld [vmem:[#allocation3] sm:$0xff]  ;;  %s1519_s15 = sshll.u32 %s1875_s14, 4  ;;  %s1520_s15 = int_to_ptr.vmem [resolvable:$true] %s1519_s15 }
  0x1a   :  { %133 = vmatpush.msra.mxu0 %v114_v4  ;;  %v112_v10 = vld [vmem:[#allocation6 + $0x20] sm:$0xff]  ;;  %259 = vmatpush.msra.mxu3 %v166_v3  ;;  %v1581_v14 = vld [vmem:[%s2181_s3] ss:$0 sm:$0xff] }
  0x1b   :  { %157 = vmatpush.msra.mxu1 %v109_v5  ;;  %189 = vmatpush.msra.mxu2 %v165_v6  ;;  %v107_v11 = vld [vmem:[#allocation6] sm:$0xff] }
  0x1c   :  { %134 = vmatpush.msra.mxu0 %v113_v7  ;;  %260 = vmatpush.msra.mxu3 %v165_v6 }
  0x1d   :  { %158 = vmatpush.msra.mxu1 %v108_v8  ;;  %190 = vmatpush.msra.mxu2 %v164_v9 }
  0x1e   :  { %135 = vmatpush.msra.mxu0 %v112_v10  ;;  %191 = vmatmul.f32.vlgmr.msra.gmra.mxu2 %v1872_v13 }
  0x1f   :  { %159 = vmatpush.msra.mxu1 %v107_v11  ;;  %1533 = vmatmul.msk.f32.vlgmr.msra.gmra.mxu0 %vm116_vm0, %v106_v12 }
  0x20   :  { %1534 = vmatmul.msk.f32.vlgmr.msra.gmra.mxu1 %vm116_vm0, %v106_v12  ;;  %261 = vmatpush.msra.mxu3 %v164_v9 }
  0x21   :  { %338 = vmatpush.msrb.mxu0 %v167_v0  ;;  %418 = vmatpush.msrb.mxu1 %v167_v0 }
  0x22   :  { %495 = vmatpush.msrb.mxu2 %v167_v0  ;;  %572 = vmatpush.msrb.mxu3 %v167_v0 }
  0x23   :  { %339 = vmatpush.msrb.mxu0 %v166_v3  ;;  %419 = vmatpush.msrb.mxu1 %v166_v3 }
  0x24   :  { %496 = vmatpush.msrb.mxu2 %v166_v3  ;;  %573 = vmatpush.msrb.mxu3 %v166_v3 }
  0x25   :  { %340 = vmatpush.msrb.mxu0 %v165_v6  ;;  %420 = vmatpush.msrb.mxu1 %v165_v6 }
  0x26   :  { %497 = vmatpush.msrb.mxu2 %v165_v6  ;;  %574 = vmatpush.msrb.mxu3 %v165_v6 }
  0x27   :  { %341 = vmatpush.msrb.mxu0 %v164_v9  ;;  %421 = vmatpush.msrb.mxu1 %v164_v9 }
  0x28   :  { %498 = vmatpush.msrb.mxu2 %v164_v9  ;;  %575 = vmatpush.msrb.mxu3 %v164_v9 }
  0x29   :  { %649 = vmatpush.msra.mxu0 %v167_v0  ;;  %726 = vmatpush.msra.mxu1 %v167_v0 }
  0x2b   :  { %650 = vmatpush.msra.mxu0 %v166_v3  ;;  %727 = vmatpush.msra.mxu1 %v166_v3 }
  0x2d   :  { %651 = vmatpush.msra.mxu0 %v165_v6  ;;  %728 = vmatpush.msra.mxu1 %v165_v6 }
  0x2f   :  { %652 = vmatpush.msra.mxu0 %v164_v9  ;;  %729 = vmatpush.msra.mxu1 %v164_v9 }
  0x9c   :  { %v1942_v15 = vpop.f32.mrf.mxu0 }
  0x9d   :  { %v161_v16 = vpop.f32.mrf.mxu1  ;;  %v169_v18 = vrot.slane %v1942_v15, 7  ;;  %v241_v45 = vrot.slane %v1942_v15, 5  ;;  %v318_v11 = vrot.slane %v1942_v15, 3 }
  0x9e   :  { %v1944_v17 = vadd.f32 %v1581_v14, %v161_v16 }
  0xa0   :  { %v1948_v19 = vadd.f32 %v169_v18, %v1944_v17  ;;  %v1960_v47 = vadd.f32 %v241_v45, %v1944_v17  ;;  %v1973_v14 = vadd.f32 %v318_v11, %v1944_v17  ;;  %v398_v45 = vrot.slane %v1942_v15, 1 }
  0xa1   :  { %v192_v20 = vpop.f32.mrf.mxu2 }
  0xa2   :  { %v195_v21 = vadd.f32 %v192_v20, %v1948_v19 }
  0xa4   :  { %1585 = vtanh.f32 %v195_v21  ;;  %v1535_v23 = vmul.f32 -1.442695, %v195_v21 }
  0xa6   :  { %1587 = vpow2.f32 %v1535_v23 }
  0xaa   :  { %v1586_v22 = vpop.eup %1585 }
  0xab   :  { %218 = vrot.lane.b32.xlu0 %v1586_v22, %s1873_s29 }
  0xac   :  { %v1588_v24 = vpop.eup %1587 }
  0xad   :  { %v199_v25 = vadd.f32 1.0, %v1588_v24 }
  0xaf   :  { %1589 = vrcp.f32 %v199_v25  ;;  %v211_v31 = vand.u32 2147483648, %v199_v25  ;;  %vm205_vm2 = vweird.f32 %v199_v25  ;;  %v209_v32 = vand.u32 2147483647, %v199_v25 }
  0xb1   :  { %v212_v34 = vor.u32 1.1754944e-38, %v211_v31  ;;  %vm210_vm4 = vcmp.eq.f32.partialorder %v209_v32, 8.507059e+37 }
  0xb5   :  { %v1590_v26 = vpop.eup %1589 }
  0xb6   :  { %v201_v27 = vmul.f32 %v1590_v26, %v199_v25  ;;  %vm206_vm1 = vweird.f32 %v1590_v26 }
  0xb7   :  { %vm207_vm3 = vmor %vm205_vm2, %vm206_vm1 }
  0xb8   :  { %v202_v28 = vsub.f32 1.0, %v201_v27 }
  0xba   :  { %v203_v29 = vmul.f32 %v1590_v26, %v202_v28 }
  0xbc   :  { %v204_v30 = vadd.f32 %v1590_v26, %v203_v29 }
  0xbe   :  { %v208_v33 = vsel %vm207_vm3, %v1590_v26, %v204_v30 }
  0xbf   :  { %v213_v36 = vsel %vm210_vm4, %v212_v34, %v208_v33 }
  0xc0   :  { %v216_v38 = vmul.f32 0.0, %v213_v36 }
 0x11d   :  { %v219_v35 = vpop.permute.xlu0 %218 }
 0x11e   :  { %v221_v37 = vmul.f32 %v219_v35, %v213_v36 }
 0x120   :  { %223 = vrot.lane.b32.xlu0 %v221_v37, %s1873_s29 }
 0x192   :  { %v224_v39 = vpop.permute.xlu0 %223 }
 0x193   :  { %v226_v40 = vadd.f32 %v224_v39, %v216_v38 }
 0x195   :  { %1591 = vtanh.f32 %v226_v40  ;;  %v291_v2 = vrot.slane %v226_v40, 7 }
 0x19b   :  { %v1592_v41 = vpop.eup %1591 }
 0x19c   :  { %229 = vrot.lane.b32.xlu1 %v1592_v41, %s1873_s29 }
 0x20e   :  { %v230_v42 = vpop.permute.xlu1 %229 }
 0x20f   :  { %v232_v43 = vmul.f32 %v230_v42, %v213_v36 }
 0x211   :  { %234 = vrot.lane.b32.xlu1 %v232_v43, %s1874_s30 }
 0x283   :  { %v235_v44 = vpop.permute.xlu1 %234 }
 0x284   :  { %238 = vst.msk [vmem:[#allocation2] sm:$0x1] %vm237_vm5, %v235_v44  ;;  %1536 = vmatmul.msk.f32.vlgmr.msra.gmra.mxu3 %vm116_vm0, %v235_v44 }
 0x285   :  { %240 = vst.msk [vmem:[#allocation2 + $0x7] sm:$0x1] %vm239_vm6, %v235_v44 }
 0x307   :  { %v263_v46 = vpop.f32.mrf.mxu3 }
 0x308   :  { %v267_v48 = vrot.slane %v263_v46, 7 }
 0x30a   :  { %v269_v49 = vadd.f32 %v267_v48, %v1960_v47  ;;  %v1986_v48 = vadd.f32 %v398_v45, %v1944_v17 }
 0x30c   :  { %1593 = vtanh.f32 %v269_v49  ;;  %v1537_v51 = vmul.f32 -1.442695, %v269_v49 }
 0x30e   :  { %1595 = vpow2.f32 %v1537_v51 }
 0x312   :  { %v1594_v50 = vpop.eup %1593 }
 0x313   :  { %295 = vrot.lane.b32.xlu2 %v1594_v50, %s1873_s29 }
 0x314   :  { %v1596_v52 = vpop.eup %1595 }
 0x315   :  { %v273_v53 = vadd.f32 1.0, %v1596_v52 }
 0x317   :  { %1597 = vrcp.f32 %v273_v53  ;;  %v285_v59 = vand.u32 2147483648, %v273_v53  ;;  %vm279_vm8 = vweird.f32 %v273_v53  ;;  %v283_v60 = vand.u32 2147483647, %v273_v53 }
 0x319   :  { %v286_v62 = vor.u32 1.1754944e-38, %v285_v59  ;;  %vm284_vm10 = vcmp.eq.f32.partialorder %v283_v60, 8.507059e+37 }
 0x31d   :  { %v1598_v54 = vpop.eup %1597 }
 0x31e   :  { %v275_v55 = vmul.f32 %v1598_v54, %v273_v53  ;;  %vm280_vm7 = vweird.f32 %v1598_v54 }
 0x31f   :  { %vm281_vm9 = vmor %vm279_vm8, %vm280_vm7 }
 0x320   :  { %v276_v56 = vsub.f32 1.0, %v275_v55 }
 0x322   :  { %v277_v57 = vmul.f32 %v1598_v54, %v276_v56 }
 0x324   :  { %v278_v58 = vadd.f32 %v1598_v54, %v277_v57 }
 0x326   :  { %v282_v61 = vsel %vm281_vm9, %v1598_v54, %v278_v58 }
 0x327   :  { %v287_v0 = vsel %vm284_vm10, %v286_v62, %v282_v61 }
 0x328   :  { %v293_v3 = vmul.f32 %v291_v2, %v287_v0 }
 0x36d   :  { %v296_v63 = vpop.permute.xlu2 %295 }
 0x36e   :  { %v298_v1 = vmul.f32 %v296_v63, %v287_v0 }
 0x370   :  { %300 = vrot.lane.b32.xlu2 %v298_v1, %s1873_s29 }
 0x3ca   :  { %v301_v4 = vpop.permute.xlu2 %300 }
 0x3cb   :  { %v303_v5 = vadd.f32 %v301_v4, %v293_v3 }
 0x3cd   :  { %1599 = vtanh.f32 %v303_v5  ;;  %v371_v36 = vrot.slane %v303_v5, 7 }
 0x3d3   :  { %v1600_v6 = vpop.eup %1599 }
 0x3d4   :  { %306 = vrot.lane.b32.xlu0 %v1600_v6, %s1873_s29 }
 0x446   :  { %v307_v7 = vpop.permute.xlu0 %306 }
 0x447   :  { %v1966_v8 = vmul.f32 %v307_v7, %v287_v0 }
 0x449   :  { %v321_v9 = vrot.slane %v1966_v8, 1 }
 0x44b   :  { %322 = vrot.lane.b32.xlu1 %v321_v9, %s1874_s30 }
 0x4bd   :  { %v323_v10 = vpop.permute.xlu1 %322 }
 0x4be   :  { %1538 = vmatmul.msk.f32.vlgmr.msrb.gmra.mxu0 %vm116_vm0, %v323_v10 }
 0x53b   :  { %v343_v12 = vpop.f32.mrf.mxu0 }
 0x53c   :  { %v347_v16 = vrot.slane %v343_v12, 6 }
 0x53e   :  { %v349_v18 = vadd.f32 %v347_v16, %v1973_v14 }
 0x540   :  { %1601 = vtanh.f32 %v349_v18  ;;  %v1539_v21 = vmul.f32 -1.442695, %v349_v18 }
 0x542   :  { %1603 = vpow2.f32 %v1539_v21 }
 0x546   :  { %v1602_v20 = vpop.eup %1601 }
 0x547   :  { %375 = vrot.lane.b32.xlu2 %v1602_v20, %s1873_s29 }
 0x548   :  { %v1604_v22 = vpop.eup %1603 }
 0x549   :  { %v353_v23 = vadd.f32 1.0, %v1604_v22 }
 0x54b   :  { %1605 = vrcp.f32 %v353_v23  ;;  %v365_v29 = vand.u32 2147483648, %v353_v23  ;;  %vm359_vm12 = vweird.f32 %v353_v23  ;;  %v363_v30 = vand.u32 2147483647, %v353_v23 }
 0x54d   :  { %v366_v32 = vor.u32 1.1754944e-38, %v365_v29  ;;  %vm364_vm14 = vcmp.eq.f32.partialorder %v363_v30, 8.507059e+37 }
 0x551   :  { %v1606_v24 = vpop.eup %1605 }
 0x552   :  { %v355_v25 = vmul.f32 %v1606_v24, %v353_v23  ;;  %vm360_vm11 = vweird.f32 %v1606_v24 }
 0x553   :  { %vm361_vm13 = vmor %vm359_vm12, %vm360_vm11 }
 0x554   :  { %v356_v26 = vsub.f32 1.0, %v355_v25 }
 0x556   :  { %v357_v27 = vmul.f32 %v1606_v24, %v356_v26 }
 0x558   :  { %v358_v28 = vadd.f32 %v1606_v24, %v357_v27 }
 0x55a   :  { %v362_v31 = vsel %vm361_vm13, %v1606_v24, %v358_v28 }
 0x55b   :  { %v367_v34 = vsel %vm364_vm14, %v366_v32, %v362_v31 }
 0x55c   :  { %v373_v37 = vmul.f32 %v371_v36, %v367_v34 }
 0x5a1   :  { %v376_v33 = vpop.permute.xlu2 %375 }
 0x5a2   :  { %v378_v35 = vmul.f32 %v376_v33, %v367_v34 }
 0x5a4   :  { %380 = vrot.lane.b32.xlu0 %v378_v35, %s1873_s29 }
 0x616   :  { %v381_v38 = vpop.permute.xlu0 %380 }
 0x617   :  { %v383_v39 = vadd.f32 %v381_v38, %v373_v37 }
 0x619   :  { %1607 = vtanh.f32 %v383_v39  ;;  %v451_v1 = vrot.slane %v383_v39, 7 }
 0x61f   :  { %v1608_v40 = vpop.eup %1607 }
 0x620   :  { %386 = vrot.lane.b32.xlu1 %v1608_v40, %s1873_s29 }
 0x692   :  { %v387_v41 = vpop.permute.xlu1 %386 }
 0x693   :  { %v1979_v42 = vmul.f32 %v387_v41, %v367_v34 }
 0x695   :  { %v401_v43 = vrot.slane %v1979_v42, 2 }
 0x697   :  { %402 = vrot.lane.b32.xlu2 %v401_v43, %s1874_s30 }
 0x6f1   :  { %v403_v44 = vpop.permute.xlu2 %402 }
 0x6f2   :  { %1540 = vmatmul.msk.f32.vlgmr.msrb.gmra.mxu1 %vm116_vm0, %v403_v44 }
 0x76f   :  { %v423_v46 = vpop.f32.mrf.mxu1 }
 0x770   :  { %v427_v49 = vrot.slane %v423_v46, 5 }
 0x772   :  { %v429_v50 = vadd.f32 %v427_v49, %v1986_v48 }
 0x774   :  { %1609 = vtanh.f32 %v429_v50  ;;  %v1541_v52 = vmul.f32 -1.442695, %v429_v50 }
 0x776   :  { %1611 = vpow2.f32 %v1541_v52 }
 0x77a   :  { %v1610_v51 = vpop.eup %1609 }
 0x77b   :  { %455 = vrot.lane.b32.xlu0 %v1610_v51, %s1873_s29 }
 0x77c   :  { %v1612_v53 = vpop.eup %1611 }
 0x77d   :  { %v433_v54 = vadd.f32 1.0, %v1612_v53 }
 0x77f   :  { %1613 = vrcp.f32 %v433_v54  ;;  %v445_v17 = vand.u32 2147483648, %v433_v54  ;;  %vm439_vm1 = vweird.f32 %v433_v54  ;;  %v443_v59 = vand.u32 2147483647, %v433_v54 }
 0x781   :  { %v446_v61 = vor.u32 1.1754944e-38, %v445_v17  ;;  %vm444_vm3 = vcmp.eq.f32.partialorder %v443_v59, 8.507059e+37 }
 0x785   :  { %v1614_v55 = vpop.eup %1613 }
 0x786   :  { %v435_v56 = vmul.f32 %v1614_v55, %v433_v54  ;;  %vm440_vm15 = vweird.f32 %v1614_v55 }
 0x787   :  { %vm441_vm2 = vmor %vm439_vm1, %vm440_vm15 }
 0x788   :  { %v436_v57 = vsub.f32 1.0, %v435_v56 }
 0x78a   :  { %v437_v15 = vmul.f32 %v1614_v55, %v436_v57 }
 0x78c   :  { %v438_v58 = vadd.f32 %v1614_v55, %v437_v15 }
 0x78e   :  { %v442_v60 = vsel %vm441_vm2, %v1614_v55, %v438_v58 }
 0x78f   :  { %v447_v63 = vsel %vm444_vm3, %v446_v61, %v442_v60 }
 0x790   :  { %v453_v2 = vmul.f32 %v451_v1, %v447_v63 }
 0x7ed   :  { %v456_v62 = vpop.permute.xlu0 %455 }
 0x7ee   :  { %v458_v0 = vmul.f32 %v456_v62, %v447_v63 }
 0x7f0   :  { %460 = vrot.lane.b32.xlu1 %v458_v0, %s1873_s29 }
 0x862   :  { %v461_v3 = vpop.permute.xlu1 %460 }
 0x863   :  { %v463_v4 = vadd.f32 %v461_v3, %v453_v2 }
 0x865   :  { %1615 = vtanh.f32 %v463_v4  ;;  %v528_v34 = vrot.slane %v463_v4, 7 }
 0x86b   :  { %v1616_v5 = vpop.eup %1615 }
 0x86c   :  { %466 = vrot.lane.b32.xlu2 %v1616_v5, %s1873_s29 }
 0x8c6   :  { %v467_v6 = vpop.permute.xlu2 %466 }
 0x8c7   :  { %v1992_v7 = vmul.f32 %v467_v6, %v447_v63 }
 0x8c9   :  { %v478_v9 = vrot.slane %v1992_v7, 3 }
 0x8cb   :  { %479 = vrot.lane.b32.xlu0 %v478_v9, %s1874_s30 }
 0x93d   :  { %v480_v10 = vpop.permute.xlu0 %479 }
 0x93e   :  { %1542 = vmatmul.msk.f32.vlgmr.msrb.gmra.mxu2 %vm116_vm0, %v480_v10 }
 0x9c1   :  { %v500_v11 = vpop.f32.mrf.mxu2 }
 0x9c2   :  { %v504_v12 = vrot.slane %v500_v11, 4 }
 0x9c4   :  { %v506_v16 = vadd.f32 %v504_v12, %v1948_v19 }
 0x9c6   :  { %1617 = vtanh.f32 %v506_v16  ;;  %v1543_v20 = vmul.f32 -1.442695, %v506_v16 }
 0x9c8   :  { %1619 = vpow2.f32 %v1543_v20 }
 0x9cc   :  { %v1618_v18 = vpop.eup %1617 }
 0x9cd   :  { %532 = vrot.lane.b32.xlu1 %v1618_v18, %s1873_s29 }
 0x9ce   :  { %v1620_v21 = vpop.eup %1619 }
 0x9cf   :  { %v510_v22 = vadd.f32 1.0, %v1620_v21 }
 0x9d1   :  { %1621 = vrcp.f32 %v510_v22  ;;  %v522_v28 = vand.u32 2147483648, %v510_v22  ;;  %vm516_vm7 = vweird.f32 %v510_v22  ;;  %v520_v29 = vand.u32 2147483647, %v510_v22 }
 0x9d3   :  { %v523_v30 = vor.u32 1.1754944e-38, %v522_v28  ;;  %vm521_vm9 = vcmp.eq.f32.partialorder %v520_v29, 8.507059e+37 }
 0x9d7   :  { %v1622_v23 = vpop.eup %1621 }
 0x9d8   :  { %v512_v24 = vmul.f32 %v1622_v23, %v510_v22  ;;  %vm517_vm4 = vweird.f32 %v1622_v23 }
 0x9d9   :  { %vm518_vm8 = vmor %vm516_vm7, %vm517_vm4 }
 0x9da   :  { %v513_v25 = vsub.f32 1.0, %v512_v24 }
 0x9dc   :  { %v514_v26 = vmul.f32 %v1622_v23, %v513_v25 }
 0x9de   :  { %v515_v27 = vadd.f32 %v1622_v23, %v514_v26 }
 0x9e0   :  { %v519_v19 = vsel %vm518_vm8, %v1622_v23, %v515_v27 }
 0x9e1   :  { %v524_v32 = vsel %vm521_vm9, %v523_v30, %v519_v19  ;;  %vm314_vm9 = vcmask 123905  }
 0x9e2   :  { %v530_v35 = vmul.f32 %v528_v34, %v524_v32 }
 0xa3f   :  { %v533_v31 = vpop.permute.xlu1 %532 }
 0xa40   :  { %v535_v33 = vmul.f32 %v533_v31, %v524_v32 }
 0xa42   :  { %537 = vrot.lane.b32.xlu2 %v535_v33, %s1873_s29 }
 0xa9c   :  { %v538_v36 = vpop.permute.xlu2 %537 }
 0xa9d   :  { %v540_v37 = vadd.f32 %v538_v36, %v530_v35 }
 0xa9f   :  { %1623 = vtanh.f32 %v540_v37  ;;  %v605_v62 = vrot.slane %v540_v37, 7 }
 0xaa5   :  { %v1624_v38 = vpop.eup %1623 }
 0xaa6   :  { %543 = vrot.lane.b32.xlu0 %v1624_v38, %s1873_s29 }
 0xb18   :  { %v544_v39 = vpop.permute.xlu0 %543 }
 0xb19   :  { %v2001_v40 = vmul.f32 %v544_v39, %v524_v32 }
 0xb1b   :  { %v555_v41 = vrot.slane %v2001_v40, 4 }
 0xb1d   :  { %556 = vrot.lane.b32.xlu1 %v555_v41, %s1874_s30 }
 0xb8f   :  { %v557_v43 = vpop.permute.xlu1 %556 }
 0xb90   :  { %1544 = vmatmul.msk.f32.vlgmr.msrb.gmra.mxu3 %vm116_vm0, %v557_v43 }
 0xc13   :  { %v577_v44 = vpop.f32.mrf.mxu3 }
 0xc14   :  { %v581_v45 = vrot.slane %v577_v44, 3 }
 0xc16   :  { %v583_v46 = vadd.f32 %v581_v45, %v1960_v47 }
 0xc18   :  { %1625 = vtanh.f32 %v583_v46  ;;  %v1545_v50 = vmul.f32 -1.442695, %v583_v46 }
 0xc1a   :  { %1627 = vpow2.f32 %v1545_v50 }
 0xc1e   :  { %v1626_v49 = vpop.eup %1625 }
 0xc1f   :  { %609 = vrot.lane.b32.xlu2 %v1626_v49, %s1873_s29 }
 0xc20   :  { %v1628_v51 = vpop.eup %1627 }
 0xc21   :  { %v587_v52 = vadd.f32 1.0, %v1628_v51 }
 0xc23   :  { %1629 = vrcp.f32 %v587_v52  ;;  %v599_v15 = vand.u32 2147483648, %v587_v52  ;;  %vm593_vm11 = vweird.f32 %v587_v52  ;;  %v597_v58 = vand.u32 2147483647, %v587_v52 }
 0xc25   :  { %v600_v17 = vor.u32 1.1754944e-38, %v599_v15  ;;  %vm598_vm13 = vcmp.eq.f32.partialorder %v597_v58, 8.507059e+37 }
 0xc29   :  { %v1630_v53 = vpop.eup %1629 }
 0xc2a   :  { %v589_v54 = vmul.f32 %v1630_v53, %v587_v52  ;;  %vm594_vm10 = vweird.f32 %v1630_v53 }
 0xc2b   :  { %vm595_vm12 = vmor %vm593_vm11, %vm594_vm10  ;;  %vm316_vm10 = vcmask 255105   ;;  %vm394_vm11 = vcmask 124930  }
 0xc2c   :  { %v590_v55 = vsub.f32 1.0, %v589_v54 }
 0xc2e   :  { %v591_v56 = vmul.f32 %v1630_v53, %v590_v55 }
 0xc30   :  { %v592_v57 = vadd.f32 %v1630_v53, %v591_v56 }
 0xc32   :  { %v596_v47 = vsel %vm595_vm12, %v1630_v53, %v592_v57  ;;  %vm396_vm12 = vcmask 256130  }
 0xc33   :  { %v601_v60 = vsel %vm598_vm13, %v600_v17, %v596_v47  ;;  %vm628_vm13 = vcmask 128005  }
 0xc34   :  { %v607_v63 = vmul.f32 %v605_v62, %v601_v60 }
 0xc79   :  { %v610_v59 = vpop.permute.xlu2 %609 }
 0xc7a   :  { %v612_v61 = vmul.f32 %v610_v59, %v601_v60 }
 0xc7c   :  { %614 = vrot.lane.b32.xlu0 %v612_v61, %s1873_s29 }
 0xcee   :  { %v615_v0 = vpop.permute.xlu0 %614 }
 0xcef   :  { %v617_v1 = vadd.f32 %v615_v0, %v607_v63 }
 0xcf1   :  { %1631 = vtanh.f32 %v617_v1  ;;  %v682_v31 = vrot.slane %v617_v1, 7 }
 0xcf7   :  { %v1632_v2 = vpop.eup %1631 }
 0xcf8   :  { %620 = vrot.lane.b32.xlu1 %v1632_v2, %s1873_s29 }
 0xd6a   :  { %v621_v3 = vpop.permute.xlu1 %620 }
 0xd6b   :  { %v2010_v4 = vmul.f32 %v621_v3, %v601_v60 }
 0xd6d   :  { %v632_v5 = vrot.slane %v2010_v4, 5 }
 0xd6f   :  { %633 = vrot.lane.b32.xlu2 %v632_v5, %s1874_s30  ;;  %v791_v5 = vld [vmem:[#allocation6 + $0x58] sm:$0xff] }
 0xd70   :  { %837 = vmatpush.msra.mxu3 %v791_v5 }
 0xdc9   :  { %v634_v6 = vpop.permute.xlu2 %633 }
 0xdca   :  { %1546 = vmatmul.msk.f32.vlgmr.msra.gmra.mxu0 %vm116_vm0, %v634_v6  ;;  %v795_v6 = vld [vmem:[#allocation6 + $0x70] sm:$0xff] }
 0xe47   :  { %v654_v9 = vpop.f32.mrf.mxu0 }
 0xe48   :  { %v658_v10 = vrot.slane %v654_v9, 2  ;;  %v790_v9 = vld [vmem:[#allocation6 + $0x50] sm:$0xff] }
 0xe49   :  { %838 = vmatpush.msra.mxu3 %v790_v9 }
 0xe4a   :  { %v660_v11 = vadd.f32 %v658_v10, %v1973_v14  ;;  %v794_v10 = vld [vmem:[#allocation6 + $0x68] sm:$0xff] }
 0xe4c   :  { %1633 = vtanh.f32 %v660_v11  ;;  %v1547_v16 = vmul.f32 -1.442695, %v660_v11  ;;  %v789_v11 = vld [vmem:[#allocation6 + $0x48] sm:$0xff] }
 0xe4d   :  { %839 = vmatpush.msra.mxu3 %v789_v11 }
 0xe4e   :  { %1635 = vpow2.f32 %v1547_v16  ;;  %v788_v16 = vld [vmem:[#allocation6 + $0x40] sm:$0xff] }
 0xe4f   :  { %840 = vmatpush.msra.mxu3 %v788_v16 }
 0xe52   :  { %v1634_v12 = vpop.eup %1633 }
 0xe53   :  { %686 = vrot.lane.b32.xlu0 %v1634_v12, %s1873_s29  ;;  %v793_v12 = vld [vmem:[#allocation6 + $0x60] sm:$0xff] }
 0xe54   :  { %v1636_v18 = vpop.eup %1635 }
 0xe55   :  { %v664_v20 = vadd.f32 1.0, %v1636_v18  ;;  %v849_v18 = vld [vmem:[#allocation8 + $0x38] sm:$0xff] }
 0xe56   :  { %866 = vmatpush.msrb.mxu0 %v849_v18  ;;  %935 = vmatpush.msrb.mxu1 %v849_v18 }
 0xe57   :  { %1637 = vrcp.f32 %v664_v20  ;;  %v676_v26 = vand.u32 2147483648, %v664_v20  ;;  %vm670_vm15 = vweird.f32 %v664_v20  ;;  %v674_v27 = vand.u32 2147483647, %v664_v20  ;;  %1091 = vmatpush.msrb.mxu3 %v849_v18 }
 0xe59   :  { %v677_v28 = vor.u32 1.1754944e-38, %v676_v26  ;;  %vm675_vm2 = vcmp.eq.f32.partialorder %v674_v27, 8.507059e+37 }
 0xe5d   :  { %v1638_v21 = vpop.eup %1637 }
 0xe5e   :  { %v666_v22 = vmul.f32 %v1638_v21, %v664_v20  ;;  %vm671_vm14 = vweird.f32 %v1638_v21  ;;  %v848_v20 = vld [vmem:[#allocation8 + $0x30] sm:$0xff] }
 0xe5f   :  { %vm672_vm1 = vmor %vm670_vm15, %vm671_vm14  ;;  %vm630_vm14 = vcmask 259205   ;;  %vm474_vm15 = vcmask 125955   ;;  %867 = vmatpush.msrb.mxu0 %v848_v20  ;;  %936 = vmatpush.msrb.mxu1 %v848_v20 }
 0xe60   :  { %v667_v23 = vsub.f32 1.0, %v666_v22  ;;  %v846_v22 = vld [vmem:[#allocation8 + $0x20] sm:$0xff]  ;;  %1092 = vmatpush.msrb.mxu3 %v848_v20 }
 0xe62   :  { %v668_v24 = vmul.f32 %v1638_v21, %v667_v23 }
 0xe64   :  { %v669_v25 = vadd.f32 %v1638_v21, %v668_v24 }
 0xe66   :  { %v673_v14 = vsel %vm672_vm1, %v1638_v21, %v669_v25  ;;  %vm476_vm1 = vcmask 257155   ;;  %v847_v21 = vld [vmem:[#allocation8 + $0x28] sm:$0xff] }
 0xe67   :  { %v678_v19 = vsel %vm675_vm2, %v677_v28, %v673_v14  ;;  %vm551_vm2 = vcmask 126980   ;;  %868 = vmatpush.msrb.mxu0 %v847_v21  ;;  %937 = vmatpush.msrb.mxu1 %v847_v21 }
 0xe68   :  { %v684_v32 = vmul.f32 %v682_v31, %v678_v19  ;;  %1093 = vmatpush.msrb.mxu3 %v847_v21 }
 0xe69   :  { %869 = vmatpush.msrb.mxu0 %v846_v22  ;;  %938 = vmatpush.msrb.mxu1 %v846_v22 }
 0xe6a   :  { %870 = vmatmul.f32.vlgmr.msrb.gmra.mxu0 %v1872_v13  ;;  %1094 = vmatpush.msrb.mxu3 %v846_v22  ;;  %v1582_v13 = vld [vmem:[%s2181_s3 + $0x1] ss:$0 sm:$0xff] }
 0xe6b   :  { %1166 = vmatpush.msra.mxu0 %v849_v18 }
 0xe6d   :  { %1167 = vmatpush.msra.mxu0 %v848_v20 }
 0xe6f   :  { %1168 = vmatpush.msra.mxu0 %v847_v21 }
 0xe71   :  { %1169 = vmatpush.msra.mxu0 %v846_v22 }
 0xec5   :  { %v687_v29 = vpop.permute.xlu0 %686 }
 0xec6   :  { %v689_v30 = vmul.f32 %v687_v29, %v678_v19 }
 0xec8   :  { %691 = vrot.lane.b32.xlu1 %v689_v30, %s1873_s29 }
 0xee7   :  { %v871_v28 = vpop.f32.mrf.mxu0 }
 0xf3a   :  { %v692_v33 = vpop.permute.xlu1 %691 }
 0xf3b   :  { %v694_v34 = vadd.f32 %v692_v33, %v684_v32 }
 0xf3d   :  { %1639 = vtanh.f32 %v694_v34  ;;  %v759_v17 = vrot.slane %v694_v34, 7 }
 0xf43   :  { %v1640_v35 = vpop.eup %1639 }
 0xf44   :  { %697 = vrot.lane.b32.xlu2 %v1640_v35, %s1873_s29 }
 0xf9e   :  { %v698_v36 = vpop.permute.xlu2 %697 }
 0xf9f   :  { %v700_v37 = vmul.f32 %v698_v36, %v678_v19 }
 0xfa1   :  { %v709_v38 = vrot.slane %v700_v37, 6 }
 0xfa3   :  { %710 = vrot.lane.b32.xlu0 %v709_v38, %s1874_s30 }
0x1015   :  { %v711_v39 = vpop.permute.xlu0 %710 }
0x1016   :  { %1548 = vmatmul.msk.f32.vlgmr.msra.gmra.mxu1 %vm116_vm0, %v711_v39 }
0x1017   :  { %1241 = vmatpush.msra.mxu1 %v849_v18 }
0x1019   :  { %1242 = vmatpush.msra.mxu1 %v848_v20 }
0x101b   :  { %1243 = vmatpush.msra.mxu1 %v847_v21 }
0x101d   :  { %1244 = vmatpush.msra.mxu1 %v846_v22 }
0x1093   :  { %v731_v41 = vpop.f32.mrf.mxu1 }
0x1094   :  { %v735_v43 = vrot.slane %v731_v41, 1 }
0x1096   :  { %v737_v44 = vadd.f32 %v735_v43, %v1986_v48 }
0x1098   :  { %1641 = vtanh.f32 %v737_v44  ;;  %v1549_v46 = vmul.f32 -1.442695, %v737_v44 }
0x109a   :  { %1643 = vpow2.f32 %v1549_v46 }
0x109e   :  { %v1642_v45 = vpop.eup %1641 }
0x109f   :  { %763 = vrot.lane.b32.xlu1 %v1642_v45, %s1873_s29 }
0x10a0   :  { %v1644_v49 = vpop.eup %1643 }
0x10a1   :  { %v741_v50 = vadd.f32 1.0, %v1644_v49 }
0x10a3   :  { %1645 = vrcp.f32 %v741_v50  ;;  %v753_v55 = vand.u32 2147483648, %v741_v50  ;;  %vm747_vm4 = vweird.f32 %v741_v50  ;;  %v751_v56 = vand.u32 2147483647, %v741_v50 }
0x10a5   :  { %vm752_vm8 = vcmp.eq.f32.partialorder %v751_v56, 8.507059e+37 }
0x10a7   :  { %311 = vrot.lane.b32.xlu1 %v1966_v8, %s1874_s30  ;;  %v754_v8 = vor.u32 1.1754944e-38, %v753_v55 }
0x10a9   :  { %v1646_v51 = vpop.eup %1645 }
0x10aa   :  { %v743_v52 = vmul.f32 %v1646_v51, %v741_v50  ;;  %vm748_vm3 = vweird.f32 %v1646_v51 }
0x10ab   :  { %vm749_vm7 = vmor %vm747_vm4, %vm748_vm3  ;;  %vm2191_vm3 = vcmask 258180   ;;  %vm2190_vm4 = vcmask 129030  }
0x10ac   :  { %v744_v53 = vsub.f32 1.0, %v743_v52 }
0x10ae   :  { %v745_v54 = vmul.f32 %v1646_v51, %v744_v53 }
0x10af   :  { %548 = vrot.lane.b32.xlu1 %v2001_v40, %s1874_s30 }
0x10b0   :  { %v746_v48 = vadd.f32 %v1646_v51, %v745_v54 }
0x10b2   :  { %v750_v57 = vsel %vm749_vm7, %v1646_v51, %v746_v48  ;;  %vm2187_vm7 = vcmask 260230  }
0x10b3   :  { %v755_v40 = vsel %vm752_vm8, %v754_v8, %v750_v57  ;;  %vm2189_vm8 = vcmask 130055  }
0x10b4   :  { %v761_v59 = vmul.f32 %v759_v17, %v755_v40 }
0x1111   :  { %v764_v15 = vpop.permute.xlu1 %763 }
0x1112   :  { %v766_v58 = vmul.f32 %v764_v15, %v755_v40 }
0x1114   :  { %768 = vrot.lane.b32.xlu2 %v766_v58, %s1873_s29 }
0x1119   :  { %v312_v47 = vpop.permute.xlu1 %311 }
0x111a   :  { %315 = vst.msk [vmem:[#allocation2] sm:$0x2] %vm314_vm9, %v312_v47 }
0x111b   :  { %317 = vst.msk [vmem:[#allocation2 + $0x5] sm:$0x2] %vm316_vm10, %v312_v47 }
0x111c   :  { %391 = vrot.lane.b32.xlu2 %v1979_v42, %s1874_s30 }
0x1121   :  { %v549_v3 = vpop.permute.xlu1 %548 }
0x1124   :  { %625 = vrot.lane.b32.xlu2 %v2010_v4, %s1874_s30  ;;  %v796_v4 = vld [vmem:[#allocation6 + $0x78] sm:$0xff] }
0x1125   :  { %812 = vmatpush.msra.mxu2 %v796_v4 }
0x1127   :  { %813 = vmatpush.msra.mxu2 %v795_v6 }
0x1129   :  { %814 = vmatpush.msra.mxu2 %v794_v10 }
0x112b   :  { %815 = vmatpush.msra.mxu2 %v793_v12 }
0x112d   :  { %1013 = vmatpush.msrb.mxu2 %v849_v18 }
0x112f   :  { %1014 = vmatpush.msrb.mxu2 %v848_v20 }
0x1131   :  { %1015 = vmatpush.msrb.mxu2 %v847_v21 }
0x1133   :  { %1016 = vmatpush.msrb.mxu2 %v846_v22 }
0x116e   :  { %v769_v60 = vpop.permute.xlu2 %768 }
0x116f   :  { %v771_v61 = vadd.f32 %v769_v60, %v761_v59 }
0x1171   :  { %1647 = vtanh.f32 %v771_v61 }
0x1176   :  { %v392_v62 = vpop.permute.xlu2 %391 }
0x1177   :  { %v1648_v63 = vpop.eup %1647  ;;  %395 = vst.msk [vmem:[#allocation2] sm:$0x4] %vm394_vm11, %v392_v62 }
0x1178   :  { %397 = vst.msk [vmem:[#allocation2 + $0x3] sm:$0x4] %vm396_vm12, %v392_v62  ;;  %774 = vrot.lane.b32.xlu0 %v1648_v63, %s1873_s29 }
0x117e   :  { %v626_v42 = vpop.permute.xlu2 %625 }
0x117f   :  { %629 = vst.msk [vmem:[#allocation2] sm:$0x20] %vm628_vm13, %v626_v42 }
0x1180   :  { %631 = vst.msk [vmem:[#allocation2 - $0x3] sm:$0x20] %vm630_vm14, %v626_v42  ;;  %471 = vrot.lane.b32.xlu0 %v1992_v7, %s1874_s30 }
0x1188   :  { %702 = vrot.lane.b32.xlu0 %v700_v37, %s1874_s30 }
0x11ea   :  { %v775_v0 = vpop.permute.xlu0 %774 }
0x11eb   :  { %v777_v1 = vmul.f32 %v775_v0, %v755_v40 }
0x11ed   :  { %779 = vrot.lane.b32.xlu1 %v777_v1, %s1874_s30 }
0x11f2   :  { %v472_v2 = vpop.permute.xlu0 %471 }
0x11f3   :  { %475 = vst.msk [vmem:[#allocation2] sm:$0x8] %vm474_vm15, %v472_v2 }
0x11f4   :  { %477 = vst.msk [vmem:[#allocation2 + $0x1] sm:$0x8] %vm476_vm1, %v472_v2 }
0x11f5   :  { %552 = vst.msk [vmem:[#allocation2] sm:$0x10] %vm551_vm2, %v549_v3 }
0x11f6   :  { %554 = vst.msk [vmem:[#allocation2 - $0x1] sm:$0x10] %vm2191_vm3, %v549_v3 }
0x11fa   :  { %v703_v7 = vpop.permute.xlu0 %702 }
0x11fb   :  { %706 = vst.msk [vmem:[#allocation2] sm:$0x40] %vm2190_vm4, %v703_v7 }
0x11fc   :  { %708 = vst.msk [vmem:[#allocation2 - $0x5] sm:$0x40] %vm2187_vm7, %v703_v7  ;;  %vm2188_vm7 = vcmask 261255  }
0x125f   :  { %v780_v23 = vpop.permute.xlu1 %779 }
0x1260   :  { %783 = vst.msk [vmem:[#allocation2] sm:$0x80] %vm2189_vm8, %v780_v23 }
0x1261   :  { %785 = vst.msk [vmem:[#allocation2 - $0x7] sm:$0x80] %vm2188_vm7, %v780_v23 }
0x1268   :  { %v786_v24 = vld [vmem:[#allocation2] sm:$0xff] }
0x1269   :  { %1550 = vmatmul.msk.f32.vlgmr.msra.gmra.mxu2 %vm116_vm0, %v786_v24  ;;  %1552 = vmatmul.msk.f32.vlgmr.msra.gmra.mxu3 %vm116_vm0, %v786_v24 }
0x126a   :  { %1316 = vmatpush.msra.mxu2 %v849_v18  ;;  %1391 = vmatpush.msra.mxu3 %v849_v18 }
0x126c   :  { %1317 = vmatpush.msra.mxu2 %v848_v20  ;;  %1392 = vmatpush.msra.mxu3 %v848_v20 }
0x126e   :  { %1318 = vmatpush.msra.mxu2 %v847_v21  ;;  %1393 = vmatpush.msra.mxu3 %v847_v21 }
0x1270   :  { %1319 = vmatpush.msra.mxu2 %v846_v22  ;;  %1394 = vmatpush.msra.mxu3 %v846_v22 }
0x12ec   :  { %v2057_v25 = vpop.f32.mrf.mxu2  ;;  %v842_v26 = vpop.f32.mrf.mxu3 }
0x12ed   :  { %v2059_v27 = vadd.f32 %v1582_v13, %v842_v26  ;;  %v851_v14 = vrot.slane %v2057_v25, 7  ;;  %v918_v56 = vrot.slane %v2057_v25, 5  ;;  %v993_v22 = vrot.slane %v2057_v25, 3 }
0x12ef   :  { %v2063_v29 = vadd.f32 %v851_v14, %v2059_v27  ;;  %v2075_v8 = vadd.f32 %v918_v56, %v2059_v27  ;;  %v2088_v24 = vadd.f32 %v993_v22, %v2059_v27 }
0x12f1   :  { %v874_v19 = vadd.f32 %v871_v28, %v2063_v29 }
0x12f3   :  { %1649 = vtanh.f32 %v874_v19  ;;  %v1553_v31 = vmul.f32 -1.442695, %v874_v19 }
0x12f5   :  { %1651 = vpow2.f32 %v1553_v31 }
0x12f9   :  { %v1650_v30 = vpop.eup %1649 }
0x12fa   :  { %897 = vrot.lane.b32.xlu2 %v1650_v30, %s1873_s29 }
0x12fb   :  { %v1652_v32 = vpop.eup %1651 }
0x12fc   :  { %v878_v33 = vadd.f32 1.0, %v1652_v32 }
0x12fe   :  { %1653 = vrcp.f32 %v878_v33  ;;  %v890_v39 = vand.u32 2147483648, %v878_v33  ;;  %vm884_vm8 = vweird.f32 %v878_v33  ;;  %v888_v41 = vand.u32 2147483647, %v878_v33 }
0x1300   :  { %v891_v44 = vor.u32 1.1754944e-38, %v890_v39  ;;  %vm889_vm3 = vcmp.eq.f32.partialorder %v888_v41, 8.507059e+37 }
0x1304   :  { %v1654_v34 = vpop.eup %1653 }
0x1305   :  { %v880_v35 = vmul.f32 %v1654_v34, %v878_v33  ;;  %vm885_vm7 = vweird.f32 %v1654_v34 }
0x1306   :  { %vm886_vm4 = vmor %vm884_vm8, %vm885_vm7 }
0x1307   :  { %v881_v36 = vsub.f32 1.0, %v880_v35 }
0x1309   :  { %v882_v37 = vmul.f32 %v1654_v34, %v881_v36 }
0x130b   :  { %v883_v38 = vadd.f32 %v1654_v34, %v882_v37 }
0x130d   :  { %v887_v43 = vsel %vm886_vm4, %v1654_v34, %v883_v38 }
0x130e   :  { %v892_v46 = vsel %vm889_vm3, %v891_v44, %v887_v43 }
0x130f   :  { %v895_v50 = vmul.f32 0.0, %v892_v46 }
0x1354   :  { %v898_v45 = vpop.permute.xlu2 %897 }
0x1355   :  { %v900_v49 = vmul.f32 %v898_v45, %v892_v46 }
0x1357   :  { %902 = vrot.lane.b32.xlu0 %v900_v49, %s1873_s29 }
0x13c9   :  { %v903_v51 = vpop.permute.xlu0 %902 }
0x13ca   :  { %v905_v52 = vadd.f32 %v903_v51, %v895_v50 }
0x13cc   :  { %1655 = vtanh.f32 %v905_v52  ;;  %v968_v6 = vrot.slane %v905_v52, 7 }
0x13d2   :  { %v1656_v53 = vpop.eup %1655 }
0x13d3   :  { %908 = vrot.lane.b32.xlu1 %v1656_v53, %s1873_s29 }
0x1445   :  { %v909_v54 = vpop.permute.xlu1 %908 }
0x1446   :  { %v911_v48 = vmul.f32 %v909_v54, %v892_v46 }
0x1448   :  { %913 = vrot.lane.b32.xlu2 %v911_v48, %s1874_s30 }
0x14a2   :  { %v914_v55 = vpop.permute.xlu2 %913 }
0x14a3   :  { %916 = vst.msk [vmem:[#allocation2] sm:$0x1] %vm237_vm5, %v914_v55  ;;  %1554 = vmatmul.msk.f32.vlgmr.msrb.gmra.mxu1 %vm116_vm0, %v914_v55 }
0x14a4   :  { %917 = vst.msk [vmem:[#allocation2 + $0x7] sm:$0x1] %vm239_vm6, %v914_v55  ;;  %v1071_v55 = vrot.slane %v2057_v25, 1 }
0x1520   :  { %v940_v57 = vpop.f32.mrf.mxu1 }
0x1521   :  { %v944_v15 = vrot.slane %v940_v57, 7  ;;  %v2101_v57 = vadd.f32 %v1071_v55, %v2059_v27 }
0x1523   :  { %v946_v40 = vadd.f32 %v944_v15, %v2075_v8 }
0x1525   :  { %1657 = vtanh.f32 %v946_v40  ;;  %v1555_v47 = vmul.f32 -1.442695, %v946_v40 }
0x1527   :  { %1659 = vpow2.f32 %v1555_v47 }
0x152b   :  { %v1658_v58 = vpop.eup %1657 }
0x152c   :  { %972 = vrot.lane.b32.xlu0 %v1658_v58, %s1873_s29 }
0x152d   :  { %v1660_v17 = vpop.eup %1659 }
0x152e   :  { %v950_v59 = vadd.f32 1.0, %v1660_v17 }
0x1530   :  { %1661 = vrcp.f32 %v950_v59  ;;  %v962_v0 = vand.u32 2147483648, %v950_v59  ;;  %vm956_vm6 = vweird.f32 %v950_v59  ;;  %v960_v1 = vand.u32 2147483647, %v950_v59 }
0x1532   :  { %v963_v3 = vor.u32 1.1754944e-38, %v962_v0  ;;  %vm961_vm4 = vcmp.eq.f32.partialorder %v960_v1, 8.507059e+37 }
0x1536   :  { %v1662_v60 = vpop.eup %1661 }
0x1537   :  { %v952_v61 = vmul.f32 %v1662_v60, %v950_v59  ;;  %vm957_vm5 = vweird.f32 %v1662_v60 }
0x1538   :  { %vm958_vm3 = vmor %vm956_vm6, %vm957_vm5 }
0x1539   :  { %v953_v62 = vsub.f32 1.0, %v952_v61 }
0x153b   :  { %v954_v63 = vmul.f32 %v1662_v60, %v953_v62 }
0x153d   :  { %v955_v42 = vadd.f32 %v1662_v60, %v954_v63 }
0x153f   :  { %v959_v2 = vsel %vm958_vm3, %v1662_v60, %v955_v42 }
0x1540   :  { %v964_v4 = vsel %vm961_vm4, %v963_v3, %v959_v2 }
0x1541   :  { %v970_v9 = vmul.f32 %v968_v6, %v964_v4 }
0x159e   :  { %v973_v7 = vpop.permute.xlu0 %972 }
0x159f   :  { %v975_v5 = vmul.f32 %v973_v7, %v964_v4 }
0x15a1   :  { %977 = vrot.lane.b32.xlu1 %v975_v5, %s1873_s29 }
0x1613   :  { %v978_v10 = vpop.permute.xlu1 %977 }
0x1614   :  { %v980_v11 = vadd.f32 %v978_v10, %v970_v9 }
0x1616   :  { %1663 = vtanh.f32 %v980_v11  ;;  %v1046_v45 = vrot.slane %v980_v11, 7 }
0x161c   :  { %v1664_v12 = vpop.eup %1663 }
0x161d   :  { %983 = vrot.lane.b32.xlu2 %v1664_v12, %s1873_s29 }
0x1677   :  { %v984_v16 = vpop.permute.xlu2 %983 }
0x1678   :  { %v2081_v18 = vmul.f32 %v984_v16, %v964_v4 }
0x167a   :  { %v996_v20 = vrot.slane %v2081_v18, 1 }
0x167c   :  { %997 = vrot.lane.b32.xlu0 %v996_v20, %s1874_s30 }
0x16ee   :  { %v998_v21 = vpop.permute.xlu0 %997 }
0x16ef   :  { %1556 = vmatmul.msk.f32.vlgmr.msrb.gmra.mxu2 %vm116_vm0, %v998_v21 }
0x1772   :  { %v1018_v23 = vpop.f32.mrf.mxu2 }
0x1773   :  { %v1022_v13 = vrot.slane %v1018_v23, 6 }
0x1775   :  { %v1024_v26 = vadd.f32 %v1022_v13, %v2088_v24 }
0x1777   :  { %1665 = vtanh.f32 %v1024_v26  ;;  %v1557_v28 = vmul.f32 -1.442695, %v1024_v26 }
0x1779   :  { %1667 = vpow2.f32 %v1557_v28 }
0x177d   :  { %v1666_v14 = vpop.eup %1665 }
0x177e   :  { %1050 = vrot.lane.b32.xlu1 %v1666_v14, %s1873_s29 }
0x177f   :  { %v1668_v19 = vpop.eup %1667 }
0x1780   :  { %v1028_v30 = vadd.f32 1.0, %v1668_v19 }
0x1782   :  { %1669 = vrcp.f32 %v1028_v30  ;;  %v1040_v36 = vand.u32 2147483648, %v1028_v30  ;;  %vm1034_vm8 = vweird.f32 %v1028_v30  ;;  %v1038_v37 = vand.u32 2147483647, %v1028_v30 }
0x1784   :  { %v1041_v39 = vor.u32 1.1754944e-38, %v1040_v36  ;;  %vm1039_vm6 = vcmp.eq.f32.partialorder %v1038_v37, 8.507059e+37 }
0x1788   :  { %v1670_v31 = vpop.eup %1669 }
0x1789   :  { %v1030_v32 = vmul.f32 %v1670_v31, %v1028_v30  ;;  %vm1035_vm7 = vweird.f32 %v1670_v31 }
0x178a   :  { %vm1036_vm5 = vmor %vm1034_vm8, %vm1035_vm7 }
0x178b   :  { %v1031_v33 = vsub.f32 1.0, %v1030_v32 }
0x178d   :  { %v1032_v34 = vmul.f32 %v1670_v31, %v1031_v33 }
0x178f   :  { %v1033_v35 = vadd.f32 %v1670_v31, %v1032_v34 }
0x1791   :  { %v1037_v38 = vsel %vm1036_vm5, %v1670_v31, %v1033_v35 }
0x1792   :  { %v1042_v43 = vsel %vm1039_vm6, %v1041_v39, %v1037_v38 }
0x1793   :  { %v1048_v46 = vmul.f32 %v1046_v45, %v1042_v43 }
0x17f0   :  { %v1051_v41 = vpop.permute.xlu1 %1050 }
0x17f1   :  { %v1053_v44 = vmul.f32 %v1051_v41, %v1042_v43 }
0x17f3   :  { %1055 = vrot.lane.b32.xlu2 %v1053_v44, %s1873_s29 }
0x184d   :  { %v1056_v49 = vpop.permute.xlu2 %1055 }
0x184e   :  { %v1058_v50 = vadd.f32 %v1056_v49, %v1048_v46 }
0x1850   :  { %1671 = vtanh.f32 %v1058_v50  ;;  %v1124_v4 = vrot.slane %v1058_v50, 7 }
0x1856   :  { %v1672_v51 = vpop.eup %1671 }
0x1857   :  { %1061 = vrot.lane.b32.xlu0 %v1672_v51, %s1873_s29 }
0x18c9   :  { %v1062_v52 = vpop.permute.xlu0 %1061 }
0x18ca   :  { %v2094_v53 = vmul.f32 %v1062_v52, %v1042_v43 }
0x18cc   :  { %v1074_v54 = vrot.slane %v2094_v53, 2 }
0x18ce   :  { %1075 = vrot.lane.b32.xlu1 %v1074_v54, %s1874_s30 }
0x1940   :  { %v1076_v48 = vpop.permute.xlu1 %1075 }
0x1941   :  { %1558 = vmatmul.msk.f32.vlgmr.msrb.gmra.mxu3 %vm116_vm0, %v1076_v48 }
0x19c4   :  { %v1096_v56 = vpop.f32.mrf.mxu3 }
0x19c5   :  { %v1100_v15 = vrot.slane %v1096_v56, 5 }
0x19c7   :  { %v1102_v40 = vadd.f32 %v1100_v15, %v2101_v57 }
0x19c9   :  { %1673 = vtanh.f32 %v1102_v40  ;;  %v1559_v47 = vmul.f32 -1.442695, %v1102_v40 }
0x19cb   :  { %1675 = vpow2.f32 %v1559_v47 }
0x19cf   :  { %v1674_v58 = vpop.eup %1673 }
0x19d0   :  { %1128 = vrot.lane.b32.xlu2 %v1674_v58, %s1873_s29 }
0x19d1   :  { %v1676_v17 = vpop.eup %1675 }
0x19d2   :  { %v1106_v59 = vadd.f32 1.0, %v1676_v17 }
0x19d4   :  { %1677 = vrcp.f32 %v1106_v59  ;;  %v1118_v27 = vand.u32 2147483648, %v1106_v59  ;;  %vm1112_vm4 = vweird.f32 %v1106_v59  ;;  %v1116_v42 = vand.u32 2147483647, %v1106_v59 }
0x19d6   :  { %v1119_v1 = vor.u32 1.1754944e-38, %v1118_v27  ;;  %vm1117_vm8 = vcmp.eq.f32.partialorder %v1116_v42, 8.507059e+37 }
0x19da   :  { %v1678_v60 = vpop.eup %1677 }
0x19db   :  { %v1108_v61 = vmul.f32 %v1678_v60, %v1106_v59  ;;  %vm1113_vm3 = vweird.f32 %v1678_v60 }
0x19dc   :  { %vm1114_vm7 = vmor %vm1112_vm4, %vm1113_vm3 }
0x19dd   :  { %v1109_v62 = vsub.f32 1.0, %v1108_v61 }
0x19df   :  { %v1110_v25 = vmul.f32 %v1678_v60, %v1109_v62 }
0x19e1   :  { %v1111_v63 = vadd.f32 %v1678_v60, %v1110_v25 }
0x19e3   :  { %v1115_v0 = vsel %vm1114_vm7, %v1678_v60, %v1111_v63 }
0x19e4   :  { %v1120_v3 = vsel %vm1117_vm8, %v1119_v1, %v1115_v0 }
0x19e5   :  { %v1126_v5 = vmul.f32 %v1124_v4, %v1120_v3 }
0x1a2a   :  { %v1129_v2 = vpop.permute.xlu2 %1128 }
0x1a2b   :  { %v1131_v7 = vmul.f32 %v1129_v2, %v1120_v3 }
0x1a2d   :  { %1133 = vrot.lane.b32.xlu0 %v1131_v7, %s1873_s29 }
0x1a9f   :  { %v1134_v6 = vpop.permute.xlu0 %1133 }
0x1aa0   :  { %v1136_v9 = vadd.f32 %v1134_v6, %v1126_v5 }
0x1aa2   :  { %1679 = vtanh.f32 %v1136_v9  ;;  %v1199_v41 = vrot.slane %v1136_v9, 7 }
0x1aa8   :  { %v1680_v10 = vpop.eup %1679 }
0x1aa9   :  { %1139 = vrot.lane.b32.xlu1 %v1680_v10, %s1873_s29 }
0x1b1b   :  { %v1140_v11 = vpop.permute.xlu1 %1139 }
0x1b1c   :  { %v2107_v12 = vmul.f32 %v1140_v11, %v1120_v3 }
0x1b1e   :  { %v1149_v16 = vrot.slane %v2107_v12, 3 }
0x1b20   :  { %1150 = vrot.lane.b32.xlu2 %v1149_v16, %s1874_s30 }
0x1b7a   :  { %v1151_v20 = vpop.permute.xlu2 %1150 }
0x1b7b   :  { %1560 = vmatmul.msk.f32.vlgmr.msra.gmra.mxu0 %vm116_vm0, %v1151_v20 }
0x1bf8   :  { %v1171_v21 = vpop.f32.mrf.mxu0 }
0x1bf9   :  { %v1175_v22 = vrot.slane %v1171_v21, 4 }
0x1bfb   :  { %v1177_v23 = vadd.f32 %v1175_v22, %v2063_v29 }
0x1bfd   :  { %1681 = vtanh.f32 %v1177_v23  ;;  %v1561_v26 = vmul.f32 -1.442695, %v1177_v23 }
0x1bff   :  { %1683 = vpow2.f32 %v1561_v26 }
0x1c03   :  { %v1682_v13 = vpop.eup %1681 }
0x1c04   :  { %1203 = vrot.lane.b32.xlu0 %v1682_v13, %s1873_s29 }
0x1c05   :  { %v1684_v14 = vpop.eup %1683 }
0x1c06   :  { %v1181_v28 = vadd.f32 1.0, %v1684_v14 }
0x1c08   :  { %1685 = vrcp.f32 %v1181_v28  ;;  %v1193_v34 = vand.u32 2147483648, %v1181_v28  ;;  %vm1187_vm6 = vweird.f32 %v1181_v28  ;;  %v1191_v35 = vand.u32 2147483647, %v1181_v28 }
0x1c0a   :  { %v1194_v36 = vor.u32 1.1754944e-38, %v1193_v34  ;;  %vm1192_vm4 = vcmp.eq.f32.partialorder %v1191_v35, 8.507059e+37 }
0x1c0e   :  { %v1686_v19 = vpop.eup %1685 }
0x1c0f   :  { %v1183_v30 = vmul.f32 %v1686_v19, %v1181_v28  ;;  %vm1188_vm5 = vweird.f32 %v1686_v19 }
0x1c10   :  { %vm1189_vm3 = vmor %vm1187_vm6, %vm1188_vm5 }
0x1c11   :  { %v1184_v31 = vsub.f32 1.0, %v1183_v30 }
0x1c13   :  { %v1185_v32 = vmul.f32 %v1686_v19, %v1184_v31 }
0x1c15   :  { %v1186_v33 = vadd.f32 %v1686_v19, %v1185_v32 }
0x1c17   :  { %v1190_v29 = vsel %vm1189_vm3, %v1686_v19, %v1186_v33 }
0x1c18   :  { %v1195_v38 = vsel %vm1192_vm4, %v1194_v36, %v1190_v29 }
0x1c19   :  { %v1201_v43 = vmul.f32 %v1199_v41, %v1195_v38 }
0x1c76   :  { %v1204_v37 = vpop.permute.xlu0 %1203 }
0x1c77   :  { %v1206_v39 = vmul.f32 %v1204_v37, %v1195_v38 }
0x1c79   :  { %1208 = vrot.lane.b32.xlu1 %v1206_v39, %s1873_s29 }
0x1ceb   :  { %v1209_v44 = vpop.permute.xlu1 %1208 }
0x1cec   :  { %v1211_v45 = vadd.f32 %v1209_v44, %v1201_v43 }
0x1cee   :  { %1687 = vtanh.f32 %v1211_v45  ;;  %v1274_v1 = vrot.slane %v1211_v45, 7 }
0x1cf4   :  { %v1688_v46 = vpop.eup %1687 }
0x1cf5   :  { %1214 = vrot.lane.b32.xlu2 %v1688_v46, %s1873_s29 }
0x1d4f   :  { %v1215_v49 = vpop.permute.xlu2 %1214 }
0x1d50   :  { %v2116_v50 = vmul.f32 %v1215_v49, %v1195_v38 }
0x1d52   :  { %v1224_v51 = vrot.slane %v2116_v50, 4 }
0x1d54   :  { %1225 = vrot.lane.b32.xlu0 %v1224_v51, %s1874_s30 }
0x1dc6   :  { %v1226_v52 = vpop.permute.xlu0 %1225 }
0x1dc7   :  { %1562 = vmatmul.msk.f32.vlgmr.msra.gmra.mxu1 %vm116_vm0, %v1226_v52 }
0x1e44   :  { %v1246_v54 = vpop.f32.mrf.mxu1 }
0x1e45   :  { %v1250_v48 = vrot.slane %v1246_v54, 3 }
0x1e47   :  { %v1252_v55 = vadd.f32 %v1250_v48, %v2075_v8 }
0x1e49   :  { %1689 = vtanh.f32 %v1252_v55  ;;  %v1563_v15 = vmul.f32 -1.442695, %v1252_v55 }
0x1e4b   :  { %1691 = vpow2.f32 %v1563_v15 }
0x1e4f   :  { %v1690_v56 = vpop.eup %1689 }
0x1e50   :  { %1278 = vrot.lane.b32.xlu1 %v1690_v56, %s1873_s29 }
0x1e51   :  { %v1692_v40 = vpop.eup %1691 }
0x1e52   :  { %v1256_v58 = vadd.f32 1.0, %v1692_v40 }
0x1e54   :  { %1693 = vrcp.f32 %v1256_v58  ;;  %v1268_v62 = vand.u32 2147483648, %v1256_v58  ;;  %vm1262_vm8 = vweird.f32 %v1256_v58  ;;  %v1266_v25 = vand.u32 2147483647, %v1256_v58 }
0x1e56   :  { %v1269_v63 = vor.u32 1.1754944e-38, %v1268_v62  ;;  %vm1267_vm6 = vcmp.eq.f32.partialorder %v1266_v25, 8.507059e+37 }
0x1e5a   :  { %v1694_v47 = vpop.eup %1693 }
0x1e5b   :  { %v1258_v17 = vmul.f32 %v1694_v47, %v1256_v58  ;;  %vm1263_vm7 = vweird.f32 %v1694_v47 }
0x1e5c   :  { %vm1264_vm5 = vmor %vm1262_vm8, %vm1263_vm7 }
0x1e5d   :  { %v1259_v59 = vsub.f32 1.0, %v1258_v17 }
0x1e5f   :  { %v1260_v60 = vmul.f32 %v1694_v47, %v1259_v59 }
0x1e61   :  { %v1261_v61 = vadd.f32 %v1694_v47, %v1260_v60 }
0x1e63   :  { %v1265_v8 = vsel %vm1264_vm5, %v1694_v47, %v1261_v61 }
0x1e64   :  { %v1270_v42 = vsel %vm1267_vm6, %v1269_v63, %v1265_v8 }
0x1e65   :  { %v1276_v2 = vmul.f32 %v1274_v1, %v1270_v42 }
0x1ec2   :  { %v1279_v27 = vpop.permute.xlu1 %1278 }
0x1ec3   :  { %v1281_v0 = vmul.f32 %v1279_v27, %v1270_v42 }
0x1ec5   :  { %1283 = vrot.lane.b32.xlu2 %v1281_v0, %s1873_s29 }
0x1f1f   :  { %v1284_v3 = vpop.permute.xlu2 %1283 }
0x1f20   :  { %v1286_v7 = vadd.f32 %v1284_v3, %v1276_v2 }
0x1f22   :  { %1695 = vtanh.f32 %v1286_v7  ;;  %v1349_v36 = vrot.slane %v1286_v7, 7 }
0x1f28   :  { %v1696_v4 = vpop.eup %1695 }
0x1f29   :  { %1289 = vrot.lane.b32.xlu0 %v1696_v4, %s1873_s29 }
0x1f9b   :  { %v1290_v5 = vpop.permute.xlu0 %1289 }
0x1f9c   :  { %v2125_v6 = vmul.f32 %v1290_v5, %v1270_v42 }
0x1f9e   :  { %v1299_v9 = vrot.slane %v2125_v6, 5 }
0x1fa0   :  { %1300 = vrot.lane.b32.xlu1 %v1299_v9, %s1874_s30  ;;  %v1451_v9 = vld [vmem:[#allocation9 + $0x8] sm:$0xff] }
0x2012   :  { %v1301_v10 = vpop.permute.xlu1 %1300 }
0x2013   :  { %1564 = vmatmul.msk.f32.vlgmr.msra.gmra.mxu2 %vm116_vm0, %v1301_v10  ;;  %v1450_v10 = vld [vmem:[#allocation9] sm:$0xff] }
0x2096   :  { %v1321_v11 = vpop.f32.mrf.mxu2 }
0x2097   :  { %v1325_v16 = vrot.slane %v1321_v11, 2  ;;  %v1485_v11 = vld [vmem:[#allocation11 + $0x18] sm:$0xff] }
0x2098   :  { %1505 = vmatpush.msrb.mxu1 %v1485_v11 }
0x2099   :  { %v1327_v20 = vadd.f32 %v1325_v16, %v2088_v24  ;;  %v1484_v16 = vld [vmem:[#allocation11 + $0x10] sm:$0xff] }
0x209a   :  { %1506 = vmatpush.msrb.mxu1 %v1484_v16 }
0x209b   :  { %1697 = vtanh.f32 %v1327_v20  ;;  %v1565_v22 = vmul.f32 -1.442695, %v1327_v20 }
0x209d   :  { %1699 = vpow2.f32 %v1565_v22  ;;  %v1483_v22 = vld [vmem:[#allocation11 + $0x8] sm:$0xff] }
0x209e   :  { %1507 = vmatpush.msrb.mxu1 %v1483_v22 }
0x20a1   :  { %v1698_v21 = vpop.eup %1697 }
0x20a2   :  { %1353 = vrot.lane.b32.xlu2 %v1698_v21, %s1873_s29 }
0x20a3   :  { %v1700_v23 = vpop.eup %1699 }
0x20a4   :  { %v1331_v13 = vadd.f32 1.0, %v1700_v23  ;;  %v1482_v23 = vld [vmem:[#allocation11] sm:$0xff] }
0x20a5   :  { %1508 = vmatpush.msrb.mxu1 %v1482_v23 }
0x20a6   :  { %1701 = vrcp.f32 %v1331_v13  ;;  %v1343_v31 = vand.u32 2147483648, %v1331_v13  ;;  %vm1337_vm4 = vweird.f32 %v1331_v13  ;;  %v1341_v32 = vand.u32 2147483647, %v1331_v13 }
0x20a8   :  { %v1344_v33 = vor.u32 1.1754944e-38, %v1343_v31  ;;  %vm1342_vm8 = vcmp.eq.f32.partialorder %v1341_v32, 8.507059e+37 }
0x20ac   :  { %v1702_v26 = vpop.eup %1701 }
0x20ad   :  { %v1333_v14 = vmul.f32 %v1702_v26, %v1331_v13  ;;  %vm1338_vm3 = vweird.f32 %v1702_v26  ;;  %v1583_v13 = vld [vmem:[%s2183_s5] ss:$0 sm:$0xff] }
0x20ae   :  { %vm1339_vm7 = vmor %vm1337_vm4, %vm1338_vm3 }
0x20af   :  { %v1334_v28 = vsub.f32 1.0, %v1333_v14 }
0x20b1   :  { %v1335_v19 = vmul.f32 %v1702_v26, %v1334_v28 }
0x20b3   :  { %v1336_v30 = vadd.f32 %v1702_v26, %v1335_v19  ;;  %v1584_v19 = vld [vmem:[%s2185_s7] ss:$0 sm:$0xff] }
0x20b5   :  { %v1340_v24 = vsel %vm1339_vm7, %v1702_v26, %v1336_v30 }
0x20b6   :  { %v1345_v35 = vsel %vm1342_vm8, %v1344_v33, %v1340_v24 }
0x20b7   :  { %v1351_v37 = vmul.f32 %v1349_v36, %v1345_v35 }
0x20fc   :  { %v1354_v34 = vpop.permute.xlu2 %1353 }
0x20fd   :  { %v1356_v29 = vmul.f32 %v1354_v34, %v1345_v35 }
0x20ff   :  { %1358 = vrot.lane.b32.xlu0 %v1356_v29, %s1873_s29 }
0x2171   :  { %v1359_v38 = vpop.permute.xlu0 %1358 }
0x2172   :  { %v1361_v39 = vadd.f32 %v1359_v38, %v1351_v37 }
0x2174   :  { %1703 = vtanh.f32 %v1361_v39  ;;  %v1424_v8 = vrot.slane %v1361_v39, 7 }
0x217a   :  { %v1704_v41 = vpop.eup %1703 }
0x217b   :  { %1364 = vrot.lane.b32.xlu1 %v1704_v41, %s1873_s29 }
0x21ed   :  { %v1365_v43 = vpop.permute.xlu1 %1364 }
0x21ee   :  { %v1367_v44 = vmul.f32 %v1365_v43, %v1345_v35 }
0x21f0   :  { %v1374_v45 = vrot.slane %v1367_v44, 6 }
0x21f2   :  { %1375 = vrot.lane.b32.xlu2 %v1374_v45, %s1874_s30 }
0x224c   :  { %v1376_v46 = vpop.permute.xlu2 %1375 }
0x224d   :  { %1566 = vmatmul.msk.f32.vlgmr.msra.gmra.mxu3 %vm116_vm0, %v1376_v46 }
0x22d0   :  { %v1396_v49 = vpop.f32.mrf.mxu3 }
0x22d1   :  { %v1400_v51 = vrot.slane %v1396_v49, 1 }
0x22d3   :  { %v1402_v52 = vadd.f32 %v1400_v51, %v2101_v57 }
0x22d5   :  { %1705 = vtanh.f32 %v1402_v52  ;;  %v1567_v48 = vmul.f32 -1.442695, %v1402_v52 }
0x22d7   :  { %1707 = vpow2.f32 %v1567_v48 }
0x22db   :  { %v1706_v54 = vpop.eup %1705 }
0x22dc   :  { %1428 = vrot.lane.b32.xlu0 %v1706_v54, %s1873_s29 }
0x22dd   :  { %v1708_v55 = vpop.eup %1707 }
0x22de   :  { %v1406_v56 = vadd.f32 1.0, %v1708_v55 }
0x22e0   :  { %1709 = vrcp.f32 %v1406_v56  ;;  %v1418_v17 = vand.u32 2147483648, %v1406_v56  ;;  %vm1412_vm6 = vweird.f32 %v1406_v56  ;;  %v1416_v59 = vand.u32 2147483647, %v1406_v56 }
0x22e2   :  { %vm1417_vm4 = vcmp.eq.f32.partialorder %v1416_v59, 8.507059e+37 }
0x22e4   :  { %988 = vrot.lane.b32.xlu0 %v2081_v18, %s1874_s30  ;;  %v1419_v18 = vor.u32 1.1754944e-38, %v1418_v17 }
0x22e6   :  { %v1710_v15 = vpop.eup %1709 }
0x22e7   :  { %v1408_v40 = vmul.f32 %v1710_v15, %v1406_v56  ;;  %vm1413_vm5 = vweird.f32 %v1710_v15 }
0x22e8   :  { %vm1414_vm3 = vmor %vm1412_vm6, %vm1413_vm5 }
0x22e9   :  { %v1409_v58 = vsub.f32 1.0, %v1408_v40 }
0x22eb   :  { %v1410_v47 = vmul.f32 %v1710_v15, %v1409_v58 }
0x22ec   :  { %1219 = vrot.lane.b32.xlu0 %v2116_v50, %s1874_s30 }
0x22ed   :  { %v1411_v57 = vadd.f32 %v1710_v15, %v1410_v47 }
0x22ef   :  { %v1415_v60 = vsel %vm1414_vm3, %v1710_v15, %v1411_v57 }
0x22f0   :  { %v1420_v50 = vsel %vm1417_vm4, %v1419_v18, %v1415_v60 }
0x22f1   :  { %v1426_v63 = vmul.f32 %v1424_v8, %v1420_v50 }
0x234e   :  { %v1429_v61 = vpop.permute.xlu0 %1428 }
0x234f   :  { %v1431_v62 = vmul.f32 %v1429_v61, %v1420_v50 }
0x2351   :  { %1433 = vrot.lane.b32.xlu1 %v1431_v62, %s1873_s29 }
0x2356   :  { %v989_v25 = vpop.permute.xlu0 %988 }
0x2357   :  { %991 = vst.msk [vmem:[#allocation2] sm:$0x2] %vm314_vm9, %v989_v25  ;;  %vm2192_vm9 = vcmask 258180  }
0x2358   :  { %992 = vst.msk [vmem:[#allocation2 + $0x5] sm:$0x2] %vm316_vm10, %v989_v25  ;;  %vm2193_vm10 = vcmask 129030  }
0x2359   :  { %1066 = vrot.lane.b32.xlu1 %v2094_v53, %s1874_s30 }
0x235e   :  { %v1220_v4 = vpop.permute.xlu0 %1219 }
0x2361   :  { %1294 = vrot.lane.b32.xlu1 %v2125_v6, %s1874_s30  ;;  %v1452_v6 = vld [vmem:[#allocation9 + $0x10] sm:$0xff] }
0x23c3   :  { %v1434_v27 = vpop.permute.xlu1 %1433 }
0x23c4   :  { %v1436_v42 = vadd.f32 %v1434_v27, %v1426_v63 }
0x23c6   :  { %1711 = vtanh.f32 %v1436_v42 }
0x23cb   :  { %v1067_v0 = vpop.permute.xlu1 %1066 }
0x23cc   :  { %v1712_v1 = vpop.eup %1711  ;;  %1069 = vst.msk [vmem:[#allocation2] sm:$0x4] %vm394_vm11, %v1067_v0  ;;  %vm2194_vm11 = vcmask 260230  }
0x23cd   :  { %1070 = vst.msk [vmem:[#allocation2 + $0x3] sm:$0x4] %vm396_vm12, %v1067_v0  ;;  %1439 = vrot.lane.b32.xlu2 %v1712_v1, %s1873_s29  ;;  %vm2195_vm12 = vcmask 130055  }
0x23d3   :  { %v1295_v2 = vpop.permute.xlu1 %1294 }
0x23d4   :  { %1297 = vst.msk [vmem:[#allocation2] sm:$0x20] %vm628_vm13, %v1295_v2  ;;  %vm2196_vm13 = vcmask 261255  }
0x23d5   :  { %1298 = vst.msk [vmem:[#allocation2 - $0x3] sm:$0x20] %vm630_vm14, %v1295_v2  ;;  %1144 = vrot.lane.b32.xlu2 %v2107_v12, %s1874_s30  ;;  %v1453_v12 = vld [vmem:[#allocation9 + $0x18] sm:$0xff] }
0x23d6   :  { %1473 = vmatpush.msrb.mxu0 %v1453_v12 }
0x23d8   :  { %1474 = vmatpush.msrb.mxu0 %v1452_v6 }
0x23da   :  { %1475 = vmatpush.msrb.mxu0 %v1451_v9 }
0x23dc   :  { %1476 = vmatpush.msrb.mxu0 %v1450_v10 }
0x23dd   :  { %1369 = vrot.lane.b32.xlu2 %v1367_v44, %s1874_s30 }
0x2427   :  { %v1440_v53 = vpop.permute.xlu2 %1439 }
0x2428   :  { %v1442_v3 = vmul.f32 %v1440_v53, %v1420_v50 }
0x242a   :  { %1444 = vrot.lane.b32.xlu0 %v1442_v3, %s1874_s30 }
0x242f   :  { %v1145_v7 = vpop.permute.xlu2 %1144 }
0x2430   :  { %1147 = vst.msk [vmem:[#allocation2] sm:$0x8] %vm474_vm15, %v1145_v7 }
0x2431   :  { %1148 = vst.msk [vmem:[#allocation2 + $0x1] sm:$0x8] %vm476_vm1, %v1145_v7 }
0x2432   :  { %1222 = vst.msk [vmem:[#allocation2] sm:$0x10] %vm551_vm2, %v1220_v4 }
0x2433   :  { %1223 = vst.msk [vmem:[#allocation2 - $0x1] sm:$0x10] %vm2192_vm9, %v1220_v4 }
0x2437   :  { %v1370_v5 = vpop.permute.xlu2 %1369 }
0x2438   :  { %1372 = vst.msk [vmem:[#allocation2] sm:$0x40] %vm2193_vm10, %v1370_v5 }
0x2439   :  { %1373 = vst.msk [vmem:[#allocation2 - $0x5] sm:$0x40] %vm2194_vm11, %v1370_v5 }
0x249c   :  { %v1445_v20 = vpop.permute.xlu0 %1444 }
0x249d   :  { %1447 = vst.msk [vmem:[#allocation2] sm:$0x80] %vm2195_vm12, %v1445_v20 }
0x249e   :  { %1448 = vst.msk [vmem:[#allocation2 - $0x7] sm:$0x80] %vm2196_vm13, %v1445_v20 }
0x24a5   :  { %v1449_v21 = vld [vmem:[#allocation2] sm:$0xff] }
0x24a6   :  { %1568 = vmatmul.msk.f32.vlgmr.msrb.gmra.mxu0 %vm116_vm0, %v1449_v21 }
0x2523   :  { %v1478_v26 = vpop.f32.mrf.mxu0 }
0x2524   :  { %v1479_v14 = vadd.f32 %v1583_v13, %v1478_v26 }
0x2526   :  { %v1481_v28 = vmax.f32 %v1479_v14, 0.0 }
0x2528   :  { %1569 = vmatmul.msk.f32.vlgmr.msrb.gmra.mxu1 %vm116_vm0, %v1481_v28 }
0x25a5   :  { %v1510_v30 = vpop.f32.mrf.mxu1 }
0x25a6   :  { %v1511_v31 = vadd.f32 %v1584_v19, %v1510_v30 }
0x25a8   :  { %1513 = vst.msk [vmem:[#allocation12] sm:$0xff] %vm116_vm0, %v1511_v31 }
0x25a9   :  { %1524 = dma.vmem_to_hbm [thread:$0]  %s1520_s15, 128, %s1522_s18, [#allocation5]  }
0x25aa   :  { %1863 = dma.done.wait [#allocation5], 128  }
0x25ab   :  { %1864 = vsyncadd [#allocation5], 4294967168 }
0x25ac   :  { %1529 = vsyncpa [#allocation4], 1 }
0x25ad   :  { %1530 = vsyncpa [#allocation7], 1 }
0x25ae   :  { %1531 = vsyncpa [#allocation10], 1 }
0x25af   :  { %1532 = vsyncpa [#allocation5], 1 }

</bundles_post_ra>
